<compile_context>
chip_gen: v7x
topology: tpu7x:2x2x1
jax: 0.10.0
libtpu: 0.0.40
codegen_flags: <defaults>
</compile_context>

<pallas_src>
import functools

import jax
import jax.numpy as jnp
from jax.experimental import pallas as pl
from jax.experimental.pallas import tpu as pltpu

# ---- model hyper-parameters (from the PyTorch module) ----
INPUT_DIM = 3
TIMESTEPS = 5
LATENT_DIM = 2
LSTM_UNITS = 128
B_PAD = 8  # sublane-aligned batch used inside the kernel


def _vae_kernel(T, Bp, H, L, Din,
                x_ref, mask_ref, eps_ref,
                wih_e_ref, whh_e_ref, b_e_ref,
                w_head_ref, b_head_ref,
                wih_d_ref, whh_d_ref, b_d_ref,
                w_out_ref, b_out_ref,
                recon_ref, mulv_ref):
    """x_ref: (T*Bp, Din) time-major-flattened, mask_ref: (T*Bp, 1), eps_ref: (Bp, L).
    recon_ref: (T*Bp, Din), mulv_ref: (Bp, 2L) = [mu | log_var].
    Gate weights pre-reordered to [i, f, o, g]; whh_* stored as bfloat16."""

    def lstm_cell(gates, c):
        sig = jax.nn.sigmoid(gates[:, :3 * H])      # one EUP launch for i, f, o
        i = sig[:, 0 * H:1 * H]
        f = sig[:, 1 * H:2 * H]
        o = sig[:, 2 * H:3 * H]
        g = jnp.tanh(gates[:, 3 * H:4 * H])
        c_new = f * c + i * g
        h_new = o * jnp.tanh(c_new)
        return h_new, c_new

    # ---------------- encoder input projection: K=Din=3 -> VPU broadcast-FMAs ----------------
    x = x_ref[...]                                   # (T*Bp, Din)
    wih_e = wih_e_ref[...]                           # (Din, 4H)
    gx_enc = jnp.broadcast_to(b_e_ref[...], (T * Bp, 4 * H))
    for k_in in range(Din):
        gx_enc = gx_enc + x[:, k_in:k_in + 1] * wih_e[k_in:k_in + 1, :]

    # ---------------- encoder LSTM (statically unrolled, bf16 MXU operands) ----------------
    whh_e = whh_e_ref[...]                           # (H, 4H) bf16
    h = jnp.zeros((Bp, H), jnp.float32)
    c = jnp.zeros((Bp, H), jnp.float32)
    for t in range(T):
        gates = gx_enc[t * Bp:(t + 1) * Bp, :] + jnp.dot(
            h.astype(jnp.bfloat16), whh_e, preferred_element_type=jnp.float32)
        h, c = lstm_cell(gates, c)

    # ---------------- fused latent heads + reparameterize (f32) ----------------
    mulv = (jnp.dot(h, w_head_ref[...], preferred_element_type=jnp.float32)
            + b_head_ref[...])                       # (Bp, 2L) = [mu | log_var]
    mu = mulv[:, :L]
    log_var = mulv[:, L:2 * L]
    z = mu + eps_ref[...] * jnp.exp(0.5 * log_var)   # (Bp, L)
    mulv_ref[...] = mulv

    # ---------------- decoder input projection: K=L=2 -> VPU broadcast-FMAs ----------------
    wih_d = wih_d_ref[...]                           # (L, 4H)
    gx_dec = jnp.broadcast_to(b_d_ref[...], (Bp, 4 * H))
    for k_in in range(L):
        gx_dec = gx_dec + z[:, k_in:k_in + 1] * wih_d[k_in:k_in + 1, :]

    # ---------------- decoder LSTM (statically unrolled, bf16 MXU operands) ----------------
    whh_d = whh_d_ref[...]                           # (H, 4H) bf16
    h = jnp.zeros((Bp, H), jnp.float32)
    c = jnp.zeros((Bp, H), jnp.float32)
    hs = []
    for t in range(T):
        gates = gx_dec + jnp.dot(h.astype(jnp.bfloat16), whh_d,
                                 preferred_element_type=jnp.float32)
        h, c = lstm_cell(gates, c)
        hs.append(h)

    # Sublane-aligned (Bp=8) fragments -> tile-aligned concat; one lane-dense matmul + store.
    h_all = jnp.concatenate(hs, axis=0)              # (T*Bp, H), time-major
    recon = (jnp.dot(h_all, w_out_ref[...], preferred_element_type=jnp.float32)
             + b_out_ref[...])                       # (T*Bp, Din)
    recon_ref[...] = recon * mask_ref[...]


# ---------------- one-time parameter preparation (off the per-call path) ----------------
def _reorder_gates(w):
    """[i, f, g, o] (PyTorch order) -> [i, f, o, g] along the last axis."""
    H = LSTM_UNITS
    return jnp.concatenate([w[..., :2 * H], w[..., 3 * H:4 * H], w[..., 2 * H:3 * H]],
                           axis=-1)


def prepare_params(params):
    """Gate reorder, fused mu/log_var head, bf16 recurrent weights. Call once, reuse."""
    return {
        "wih_e": _reorder_gates(params["wih_e"]),
        "whh_e": _reorder_gates(params["whh_e"]).astype(jnp.bfloat16),
        "b_e": _reorder_gates(params["b_e"]),
        "wih_d": _reorder_gates(params["wih_d"]),
        "whh_d": _reorder_gates(params["whh_d"]).astype(jnp.bfloat16),
        "b_d": _reorder_gates(params["b_d"]),
        "w_head": jnp.concatenate([params["w_mu"], params["w_lv"]], axis=1),  # (H, 2L)
        "b_head": jnp.concatenate([params["b_mu"], params["b_lv"]], axis=1),  # (1, 2L)
        "w_out": params["w_out"],
        "b_out": params["b_out"],
    }


@jax.jit
def vae_forward(x, mask, eps, prep):
    """x: (B, T, Din) f32, mask: (B, T) f32, eps: (B, L) f32, prep: prepare_params(...) output.
    Returns (recon_x (B,T,Din), mu (B,L), log_var (B,L)) — matches the PyTorch forward."""
    B, T, Din = x.shape
    H = LSTM_UNITS
    L = LATENT_DIM
    Bp = max(B_PAD, -(-B // 8) * 8)                  # pad batch to a multiple of 8 sublanes
    pad = Bp - B

    x_p = jnp.pad(x, ((0, pad), (0, 0), (0, 0)))
    mask_p = jnp.pad(mask, ((0, pad), (0, 0)))
    eps_p = jnp.pad(eps, ((0, pad), (0, 0)))

    # time-major, flattened to 2D for the kernel
    x_tm = jnp.transpose(x_p, (1, 0, 2)).reshape(T * Bp, Din)   # (T*Bp, Din)
    mask_tm = jnp.transpose(mask_p, (1, 0)).reshape(T * Bp, 1)  # (T*Bp, 1)

    vmem = functools.partial(pl.BlockSpec, memory_space=pltpu.MemorySpace.VMEM)
    inputs = (
        x_tm, mask_tm, eps_p,
        prep["wih_e"], prep["whh_e"], prep["b_e"],
        prep["w_head"], prep["b_head"],
        prep["wih_d"], prep["whh_d"], prep["b_d"],
        prep["w_out"], prep["b_out"],
    )

    recon_flat, mulv = pl.pallas_call(
        functools.partial(_vae_kernel, T, Bp, H, L, Din),
        out_shape=(
            jax.ShapeDtypeStruct((T * Bp, Din), jnp.float32),
            jax.ShapeDtypeStruct((Bp, 2 * L), jnp.float32),
        ),
        in_specs=[vmem() for _ in inputs],
        out_specs=(vmem(), vmem()),
        compiler_params=pltpu.CompilerParams(vmem_limit_bytes=4 << 20),
    )(*inputs)

    recon = jnp.transpose(recon_flat.reshape(T, Bp, Din), (1, 0, 2))[:B]
    mu = mulv[:B, :L]
    log_var = mulv[:B, L:]
    return recon, mu, log_var


# ---------------- deterministic parameter init (PyTorch-style U(-1/sqrt(H), 1/sqrt(H))) ----------------
def init_params(key):
    H, L, Din = LSTM_UNITS, LATENT_DIM, INPUT_DIM
    s = 1.0 / jnp.sqrt(jnp.float32(H))
    ks = jax.random.split(key, 16)

    def u(k, shape):
        return jax.random.uniform(k, shape, jnp.float32, -s, s)

    return {
        # encoder LSTM: weights stored (in, 4H), PyTorch gate order [i,f,g,o]; combined bias (1, 4H)
        "wih_e": u(ks[0], (Din, 4 * H)),
        "whh_e": u(ks[1], (H, 4 * H)),
        "b_e": u(ks[2], (1, 4 * H)) + u(ks[3], (1, 4 * H)),
        # latent heads
        "w_mu": u(ks[4], (H, L)), "b_mu": u(ks[5], (1, L)),
        "w_lv": u(ks[6], (H, L)), "b_lv": u(ks[7], (1, L)),
        # decoder LSTM
        "wih_d": u(ks[8], (L, 4 * H)),
        "whh_d": u(ks[9], (H, 4 * H)),
        "b_d": u(ks[10], (1, 4 * H)) + u(ks[11], (1, 4 * H)),
        # decoder FC
        "w_out": u(ks[12], (H, Din)), "b_out": u(ks[13], (1, Din)),
    }


# ---------------- pure-JAX f32 reference for a correctness check ----------------
def reference_forward(x, mask, eps, p):
    H = LSTM_UNITS

    def cell(gates, c):
        i = jax.nn.sigmoid(gates[:, :H])
        f = jax.nn.sigmoid(gates[:, H:2 * H])
        g = jnp.tanh(gates[:, 2 * H:3 * H])
        o = jax.nn.sigmoid(gates[:, 3 * H:])
        c = f * c + i * g
        return o * jnp.tanh(c), c

    B, T, _ = x.shape
    h = jnp.zeros((B, H)); c = jnp.zeros((B, H))
    for t in range(T):
        h, c = cell(x[:, t] @ p["wih_e"] + h @ p["whh_e"] + p["b_e"], c)
    mu = h @ p["w_mu"] + p["b_mu"]
    lv = h @ p["w_lv"] + p["b_lv"]
    z = mu + eps * jnp.exp(0.5 * lv)
    h = jnp.zeros((B, H)); c = jnp.zeros((B, H))
    outs = []
    for t in range(T):
        h, c = cell(z @ p["wih_d"] + h @ p["whh_d"] + p["b_d"], c)
        outs.append(h @ p["w_out"] + p["b_out"])
    recon = jnp.stack(outs, axis=1) * mask[..., None]
    return recon, mu, lv


if __name__ == "__main__":
    key = jax.random.PRNGKey(0)
    k_par, k_x, k_mask, k_eps = jax.random.split(key, 4)

    B = 2
    params = init_params(k_par)
    prep = prepare_params(params)   # one-time: gate reorder, fused heads, bf16 whh

    x = jax.random.normal(k_x, (B, TIMESTEPS, INPUT_DIM), jnp.float32)
    mask = (jax.random.uniform(k_mask, (B, TIMESTEPS)) > 0.3).astype(jnp.float32)
    # torch.randn_like(std) in reparameterize -> deterministic eps here
    eps = jax.random.normal(k_eps, (B, LATENT_DIM), jnp.float32)

    recon, mu, log_var = jax.block_until_ready(vae_forward(x, mask, eps, prep))

    r_recon, r_mu, r_lv = reference_forward(x, mask, eps, params)
    # bf16 recurrence operands -> slightly looser tolerance than the pure-f32 version
    assert jnp.allclose(recon, r_recon, atol=3e-2, rtol=3e-2)
    assert jnp.allclose(mu, r_mu, atol=3e-2, rtol=3e-2)
    assert jnp.allclose(log_var, r_lv, atol=3e-2, rtol=3e-2)

    print("KERNEL_OK")
</pallas_src>

<mosaic_0001>
module attributes {stable_mosaic.version = 11 : i64} {
  func.func @_vae_kernel(%arg0: memref<40x3xf32, #tpu.memory_space<vmem>>, %arg1: memref<40x1xf32, #tpu.memory_space<vmem>>, %arg2: memref<8x2xf32, #tpu.memory_space<vmem>>, %arg3: memref<3x512xf32, #tpu.memory_space<vmem>>, %arg4: memref<128x512xbf16, #tpu.memory_space<vmem>>, %arg5: memref<1x512xf32, #tpu.memory_space<vmem>>, %arg6: memref<128x4xf32, #tpu.memory_space<vmem>>, %arg7: memref<1x4xf32, #tpu.memory_space<vmem>>, %arg8: memref<2x512xf32, #tpu.memory_space<vmem>>, %arg9: memref<128x512xbf16, #tpu.memory_space<vmem>>, %arg10: memref<1x512xf32, #tpu.memory_space<vmem>>, %arg11: memref<128x3xf32, #tpu.memory_space<vmem>>, %arg12: memref<1x3xf32, #tpu.memory_space<vmem>>, %arg13: memref<40x3xf32, #tpu.memory_space<vmem>>, %arg14: memref<8x4xf32, #tpu.memory_space<vmem>>) attributes {dimension_semantics = [], scalar_prefetch = 0 : i64, scratch_operands = 0 : i64, tpu.core_type = #tpu.core_type<tc>} {
    %c0 = arith.constant 0 : index
    %c0_0 = arith.constant 0 : index
    %0 = vector.load %arg0[%c0, %c0_0] : memref<40x3xf32, #tpu.memory_space<vmem>>, vector<40x3xf32>
    %c0_1 = arith.constant 0 : index
    %c0_2 = arith.constant 0 : index
    %1 = vector.load %arg3[%c0_1, %c0_2] : memref<3x512xf32, #tpu.memory_space<vmem>>, vector<3x512xf32>
    %c0_3 = arith.constant 0 : index
    %c0_4 = arith.constant 0 : index
    %2 = vector.load %arg5[%c0_3, %c0_4] : memref<1x512xf32, #tpu.memory_space<vmem>>, vector<1x512xf32>
    %3 = vector.shape_cast %2 : vector<1x512xf32> to vector<1x512xf32>
    %4 = vector.broadcast %3 : vector<1x512xf32> to vector<40x512xf32>
    %5 = vector.extract_strided_slice %0 {offsets = [0, 0], sizes = [40, 1], strides = [1, 1]} : vector<40x3xf32> to vector<40x1xf32>
    %6 = vector.extract_strided_slice %1 {offsets = [0, 0], sizes = [1, 512], strides = [1, 1]} : vector<3x512xf32> to vector<1x512xf32>
    %7 = vector.broadcast %5 : vector<40x1xf32> to vector<40x512xf32>
    %8 = vector.broadcast %6 : vector<1x512xf32> to vector<40x512xf32>
    %9 = arith.mulf %7, %8 : vector<40x512xf32>
    %10 = arith.addf %4, %9 : vector<40x512xf32>
    %11 = vector.extract_strided_slice %0 {offsets = [0, 1], sizes = [40, 1], strides = [1, 1]} : vector<40x3xf32> to vector<40x1xf32>
    %12 = vector.extract_strided_slice %1 {offsets = [1, 0], sizes = [1, 512], strides = [1, 1]} : vector<3x512xf32> to vector<1x512xf32>
    %13 = vector.broadcast %11 : vector<40x1xf32> to vector<40x512xf32>
    %14 = vector.broadcast %12 : vector<1x512xf32> to vector<40x512xf32>
    %15 = arith.mulf %13, %14 : vector<40x512xf32>
    %16 = arith.addf %10, %15 : vector<40x512xf32>
    %17 = vector.extract_strided_slice %0 {offsets = [0, 2], sizes = [40, 1], strides = [1, 1]} : vector<40x3xf32> to vector<40x1xf32>
    %18 = vector.extract_strided_slice %1 {offsets = [2, 0], sizes = [1, 512], strides = [1, 1]} : vector<3x512xf32> to vector<1x512xf32>
    %19 = vector.broadcast %17 : vector<40x1xf32> to vector<40x512xf32>
    %20 = vector.broadcast %18 : vector<1x512xf32> to vector<40x512xf32>
    %21 = arith.mulf %19, %20 : vector<40x512xf32>
    %22 = arith.addf %16, %21 : vector<40x512xf32>
    %c0_5 = arith.constant 0 : index
    %c0_6 = arith.constant 0 : index
    %23 = vector.load %arg4[%c0_5, %c0_6] : memref<128x512xbf16, #tpu.memory_space<vmem>>, vector<128x512xbf16>
    %cst = arith.constant 0.000000e+00 : f32
    %24 = vector.broadcast %cst : f32 to vector<8x128xf32>
    %cst_7 = arith.constant 0.000000e+00 : f32
    %25 = vector.broadcast %cst_7 : f32 to vector<8x128xf32>
    %26 = vector.extract_strided_slice %22 {offsets = [0, 0], sizes = [8, 512], strides = [1, 1]} : vector<40x512xf32> to vector<8x512xf32>
    %27 = arith.truncf %24 : vector<8x128xf32> to vector<8x128xbf16>
    %cst_8 = arith.constant dense<0.000000e+00> : vector<8x512xf32>
    %28 = tpu.matmul %27, %23, %cst_8 {dimension_numbers = #tpu.dot_dimension_numbers<[1], [0], [0], [1], [0, 0, 1, 1], [], []>} : vector<8x128xbf16>, vector<128x512xbf16>, vector<8x512xf32> -> vector<8x512xf32>
    %29 = arith.addf %26, %28 : vector<8x512xf32>
    %30 = vector.extract_strided_slice %29 {offsets = [0, 0], sizes = [8, 384], strides = [1, 1]} : vector<8x512xf32> to vector<8x384xf32>
    %31 = arith.negf %30 : vector<8x384xf32>
    %32 = math.exp %31 : vector<8x384xf32>
    %cst_9 = arith.constant 1.000000e+00 : f32
    %33 = vector.broadcast %cst_9 : f32 to vector<8x384xf32>
    %34 = arith.addf %33, %32 : vector<8x384xf32>
    %35 = arith.divf %33, %34 : vector<8x384xf32>
    %36 = vector.extract_strided_slice %35 {offsets = [0, 0], sizes = [8, 128], strides = [1, 1]} : vector<8x384xf32> to vector<8x128xf32>
    %37 = vector.extract_strided_slice %35 {offsets = [0, 128], sizes = [8, 128], strides = [1, 1]} : vector<8x384xf32> to vector<8x128xf32>
    %38 = vector.extract_strided_slice %35 {offsets = [0, 256], sizes = [8, 128], strides = [1, 1]} : vector<8x384xf32> to vector<8x128xf32>
    %39 = vector.extract_strided_slice %29 {offsets = [0, 384], sizes = [8, 128], strides = [1, 1]} : vector<8x512xf32> to vector<8x128xf32>
    %40 = math.tanh %39 : vector<8x128xf32>
    %41 = arith.mulf %37, %25 : vector<8x128xf32>
    %42 = arith.mulf %36, %40 : vector<8x128xf32>
    %43 = arith.addf %41, %42 : vector<8x128xf32>
    %44 = math.tanh %43 : vector<8x128xf32>
    %45 = arith.mulf %38, %44 : vector<8x128xf32>
    %46 = vector.extract_strided_slice %22 {offsets = [8, 0], sizes = [8, 512], strides = [1, 1]} : vector<40x512xf32> to vector<8x512xf32>
    %47 = arith.truncf %45 : vector<8x128xf32> to vector<8x128xbf16>
    %cst_10 = arith.constant dense<0.000000e+00> : vector<8x512xf32>
    %48 = tpu.matmul %47, %23, %cst_10 {dimension_numbers = #tpu.dot_dimension_numbers<[1], [0], [0], [1], [0, 0, 1, 1], [], []>} : vector<8x128xbf16>, vector<128x512xbf16>, vector<8x512xf32> -> vector<8x512xf32>
    %49 = arith.addf %46, %48 : vector<8x512xf32>
    %50 = vector.extract_strided_slice %49 {offsets = [0, 0], sizes = [8, 384], strides = [1, 1]} : vector<8x512xf32> to vector<8x384xf32>
    %51 = arith.negf %50 : vector<8x384xf32>
    %52 = math.exp %51 : vector<8x384xf32>
    %cst_11 = arith.constant 1.000000e+00 : f32
    %53 = vector.broadcast %cst_11 : f32 to vector<8x384xf32>
    %54 = arith.addf %53, %52 : vector<8x384xf32>
    %55 = arith.divf %53, %54 : vector<8x384xf32>
    %56 = vector.extract_strided_slice %55 {offsets = [0, 0], sizes = [8, 128], strides = [1, 1]} : vector<8x384xf32> to vector<8x128xf32>
    %57 = vector.extract_strided_slice %55 {offsets = [0, 128], sizes = [8, 128], strides = [1, 1]} : vector<8x384xf32> to vector<8x128xf32>
    %58 = vector.extract_strided_slice %55 {offsets = [0, 256], sizes = [8, 128], strides = [1, 1]} : vector<8x384xf32> to vector<8x128xf32>
    %59 = vector.extract_strided_slice %49 {offsets = [0, 384], sizes = [8, 128], strides = [1, 1]} : vector<8x512xf32> to vector<8x128xf32>
    %60 = math.tanh %59 : vector<8x128xf32>
    %61 = arith.mulf %57, %43 : vector<8x128xf32>
    %62 = arith.mulf %56, %60 : vector<8x128xf32>
    %63 = arith.addf %61, %62 : vector<8x128xf32>
    %64 = math.tanh %63 : vector<8x128xf32>
    %65 = arith.mulf %58, %64 : vector<8x128xf32>
    %66 = vector.extract_strided_slice %22 {offsets = [16, 0], sizes = [8, 512], strides = [1, 1]} : vector<40x512xf32> to vector<8x512xf32>
    %67 = arith.truncf %65 : vector<8x128xf32> to vector<8x128xbf16>
    %cst_12 = arith.constant dense<0.000000e+00> : vector<8x512xf32>
    %68 = tpu.matmul %67, %23, %cst_12 {dimension_numbers = #tpu.dot_dimension_numbers<[1], [0], [0], [1], [0, 0, 1, 1], [], []>} : vector<8x128xbf16>, vector<128x512xbf16>, vector<8x512xf32> -> vector<8x512xf32>
    %69 = arith.addf %66, %68 : vector<8x512xf32>
    %70 = vector.extract_strided_slice %69 {offsets = [0, 0], sizes = [8, 384], strides = [1, 1]} : vector<8x512xf32> to vector<8x384xf32>
    %71 = arith.negf %70 : vector<8x384xf32>
    %72 = math.exp %71 : vector<8x384xf32>
    %cst_13 = arith.constant 1.000000e+00 : f32
    %73 = vector.broadcast %cst_13 : f32 to vector<8x384xf32>
    %74 = arith.addf %73, %72 : vector<8x384xf32>
    %75 = arith.divf %73, %74 : vector<8x384xf32>
    %76 = vector.extract_strided_slice %75 {offsets = [0, 0], sizes = [8, 128], strides = [1, 1]} : vector<8x384xf32> to vector<8x128xf32>
    %77 = vector.extract_strided_slice %75 {offsets = [0, 128], sizes = [8, 128], strides = [1, 1]} : vector<8x384xf32> to vector<8x128xf32>
    %78 = vector.extract_strided_slice %75 {offsets = [0, 256], sizes = [8, 128], strides = [1, 1]} : vector<8x384xf32> to vector<8x128xf32>
    %79 = vector.extract_strided_slice %69 {offsets = [0, 384], sizes = [8, 128], strides = [1, 1]} : vector<8x512xf32> to vector<8x128xf32>
    %80 = math.tanh %79 : vector<8x128xf32>
    %81 = arith.mulf %77, %63 : vector<8x128xf32>
    %82 = arith.mulf %76, %80 : vector<8x128xf32>
    %83 = arith.addf %81, %82 : vector<8x128xf32>
    %84 = math.tanh %83 : vector<8x128xf32>
    %85 = arith.mulf %78, %84 : vector<8x128xf32>
    %86 = vector.extract_strided_slice %22 {offsets = [24, 0], sizes = [8, 512], strides = [1, 1]} : vector<40x512xf32> to vector<8x512xf32>
    %87 = arith.truncf %85 : vector<8x128xf32> to vector<8x128xbf16>
    %cst_14 = arith.constant dense<0.000000e+00> : vector<8x512xf32>
    %88 = tpu.matmul %87, %23, %cst_14 {dimension_numbers = #tpu.dot_dimension_numbers<[1], [0], [0], [1], [0, 0, 1, 1], [], []>} : vector<8x128xbf16>, vector<128x512xbf16>, vector<8x512xf32> -> vector<8x512xf32>
    %89 = arith.addf %86, %88 : vector<8x512xf32>
    %90 = vector.extract_strided_slice %89 {offsets = [0, 0], sizes = [8, 384], strides = [1, 1]} : vector<8x512xf32> to vector<8x384xf32>
    %91 = arith.negf %90 : vector<8x384xf32>
    %92 = math.exp %91 : vector<8x384xf32>
    %cst_15 = arith.constant 1.000000e+00 : f32
    %93 = vector.broadcast %cst_15 : f32 to vector<8x384xf32>
    %94 = arith.addf %93, %92 : vector<8x384xf32>
    %95 = arith.divf %93, %94 : vector<8x384xf32>
    %96 = vector.extract_strided_slice %95 {offsets = [0, 0], sizes = [8, 128], strides = [1, 1]} : vector<8x384xf32> to vector<8x128xf32>
    %97 = vector.extract_strided_slice %95 {offsets = [0, 128], sizes = [8, 128], strides = [1, 1]} : vector<8x384xf32> to vector<8x128xf32>
    %98 = vector.extract_strided_slice %95 {offsets = [0, 256], sizes = [8, 128], strides = [1, 1]} : vector<8x384xf32> to vector<8x128xf32>
    %99 = vector.extract_strided_slice %89 {offsets = [0, 384], sizes = [8, 128], strides = [1, 1]} : vector<8x512xf32> to vector<8x128xf32>
    %100 = math.tanh %99 : vector<8x128xf32>
    %101 = arith.mulf %97, %83 : vector<8x128xf32>
    %102 = arith.mulf %96, %100 : vector<8x128xf32>
    %103 = arith.addf %101, %102 : vector<8x128xf32>
    %104 = math.tanh %103 : vector<8x128xf32>
    %105 = arith.mulf %98, %104 : vector<8x128xf32>
    %106 = vector.extract_strided_slice %22 {offsets = [32, 0], sizes = [8, 512], strides = [1, 1]} : vector<40x512xf32> to vector<8x512xf32>
    %107 = arith.truncf %105 : vector<8x128xf32> to vector<8x128xbf16>
    %cst_16 = arith.constant dense<0.000000e+00> : vector<8x512xf32>
    %108 = tpu.matmul %107, %23, %cst_16 {dimension_numbers = #tpu.dot_dimension_numbers<[1], [0], [0], [1], [0, 0, 1, 1], [], []>} : vector<8x128xbf16>, vector<128x512xbf16>, vector<8x512xf32> -> vector<8x512xf32>
    %109 = arith.addf %106, %108 : vector<8x512xf32>
    %110 = vector.extract_strided_slice %109 {offsets = [0, 0], sizes = [8, 384], strides = [1, 1]} : vector<8x512xf32> to vector<8x384xf32>
    %111 = arith.negf %110 : vector<8x384xf32>
    %112 = math.exp %111 : vector<8x384xf32>
    %cst_17 = arith.constant 1.000000e+00 : f32
    %113 = vector.broadcast %cst_17 : f32 to vector<8x384xf32>
    %114 = arith.addf %113, %112 : vector<8x384xf32>
    %115 = arith.divf %113, %114 : vector<8x384xf32>
    %116 = vector.extract_strided_slice %115 {offsets = [0, 0], sizes = [8, 128], strides = [1, 1]} : vector<8x384xf32> to vector<8x128xf32>
    %117 = vector.extract_strided_slice %115 {offsets = [0, 128], sizes = [8, 128], strides = [1, 1]} : vector<8x384xf32> to vector<8x128xf32>
    %118 = vector.extract_strided_slice %115 {offsets = [0, 256], sizes = [8, 128], strides = [1, 1]} : vector<8x384xf32> to vector<8x128xf32>
    %119 = vector.extract_strided_slice %109 {offsets = [0, 384], sizes = [8, 128], strides = [1, 1]} : vector<8x512xf32> to vector<8x128xf32>
    %120 = math.tanh %119 : vector<8x128xf32>
    %121 = arith.mulf %117, %103 : vector<8x128xf32>
    %122 = arith.mulf %116, %120 : vector<8x128xf32>
    %123 = arith.addf %121, %122 : vector<8x128xf32>
    %124 = math.tanh %123 : vector<8x128xf32>
    %125 = arith.mulf %118, %124 : vector<8x128xf32>
    %c0_18 = arith.constant 0 : index
    %c0_19 = arith.constant 0 : index
    %126 = vector.load %arg6[%c0_18, %c0_19] : memref<128x4xf32, #tpu.memory_space<vmem>>, vector<128x4xf32>
    %cst_20 = arith.constant dense<0.000000e+00> : vector<8x4xf32>
    %127 = tpu.matmul %125, %126, %cst_20 {dimension_numbers = #tpu.dot_dimension_numbers<[1], [0], [0], [1], [0, 0, 1, 1], [], []>} : vector<8x128xf32>, vector<128x4xf32>, vector<8x4xf32> -> vector<8x4xf32>
    %c0_21 = arith.constant 0 : index
    %c0_22 = arith.constant 0 : index
    %128 = vector.load %arg7[%c0_21, %c0_22] : memref<1x4xf32, #tpu.memory_space<vmem>>, vector<1x4xf32>
    %129 = vector.broadcast %128 : vector<1x4xf32> to vector<8x4xf32>
    %130 = arith.addf %127, %129 : vector<8x4xf32>
    %131 = vector.extract_strided_slice %130 {offsets = [0, 0], sizes = [8, 2], strides = [1, 1]} : vector<8x4xf32> to vector<8x2xf32>
    %132 = vector.extract_strided_slice %130 {offsets = [0, 2], sizes = [8, 2], strides = [1, 1]} : vector<8x4xf32> to vector<8x2xf32>
    %c0_23 = arith.constant 0 : index
    %c0_24 = arith.constant 0 : index
    %133 = vector.load %arg2[%c0_23, %c0_24] : memref<8x2xf32, #tpu.memory_space<vmem>>, vector<8x2xf32>
    %cst_25 = arith.constant 5.000000e-01 : f32
    %134 = vector.broadcast %cst_25 : f32 to vector<8x2xf32>
    %135 = arith.mulf %134, %132 : vector<8x2xf32>
    %136 = math.exp %135 : vector<8x2xf32>
    %137 = arith.mulf %133, %136 : vector<8x2xf32>
    %138 = arith.addf %131, %137 : vector<8x2xf32>
    %c0_26 = arith.constant 0 : index
    %c0_27 = arith.constant 0 : index
    %139 = vector.load %arg14[%c0_26, %c0_27] : memref<8x4xf32, #tpu.memory_space<vmem>>, vector<8x4xf32>
    tpu.vector_store %arg14[%c0_26, %c0_27], %130 {strides = array<i32>} : memref<8x4xf32, #tpu.memory_space<vmem>>, vector<8x4xf32>,
    %c0_28 = arith.constant 0 : index
    %c0_29 = arith.constant 0 : index
    %140 = vector.load %arg8[%c0_28, %c0_29] : memref<2x512xf32, #tpu.memory_space<vmem>>, vector<2x512xf32>
    %c0_30 = arith.constant 0 : index
    %c0_31 = arith.constant 0 : index
    %141 = vector.load %arg10[%c0_30, %c0_31] : memref<1x512xf32, #tpu.memory_space<vmem>>, vector<1x512xf32>
    %142 = vector.shape_cast %141 : vector<1x512xf32> to vector<1x512xf32>
    %143 = vector.broadcast %142 : vector<1x512xf32> to vector<8x512xf32>
    %144 = vector.extract_strided_slice %138 {offsets = [0, 0], sizes = [8, 1], strides = [1, 1]} : vector<8x2xf32> to vector<8x1xf32>
    %145 = vector.extract_strided_slice %140 {offsets = [0, 0], sizes = [1, 512], strides = [1, 1]} : vector<2x512xf32> to vector<1x512xf32>
    %146 = vector.broadcast %144 : vector<8x1xf32> to vector<8x512xf32>
    %147 = vector.broadcast %145 : vector<1x512xf32> to vector<8x512xf32>
    %148 = arith.mulf %146, %147 : vector<8x512xf32>
    %149 = arith.addf %143, %148 : vector<8x512xf32>
    %150 = vector.extract_strided_slice %138 {offsets = [0, 1], sizes = [8, 1], strides = [1, 1]} : vector<8x2xf32> to vector<8x1xf32>
    %151 = vector.extract_strided_slice %140 {offsets = [1, 0], sizes = [1, 512], strides = [1, 1]} : vector<2x512xf32> to vector<1x512xf32>
    %152 = vector.broadcast %150 : vector<8x1xf32> to vector<8x512xf32>
    %153 = vector.broadcast %151 : vector<1x512xf32> to vector<8x512xf32>
    %154 = arith.mulf %152, %153 : vector<8x512xf32>
    %155 = arith.addf %149, %154 : vector<8x512xf32>
    %c0_32 = arith.constant 0 : index
    %c0_33 = arith.constant 0 : index
    %156 = vector.load %arg9[%c0_32, %c0_33] : memref<128x512xbf16, #tpu.memory_space<vmem>>, vector<128x512xbf16>
    %cst_34 = arith.constant 0.000000e+00 : f32
    %157 = vector.broadcast %cst_34 : f32 to vector<8x128xf32>
    %cst_35 = arith.constant 0.000000e+00 : f32
    %158 = vector.broadcast %cst_35 : f32 to vector<8x128xf32>
    %159 = arith.truncf %157 : vector<8x128xf32> to vector<8x128xbf16>
    %cst_36 = arith.constant dense<0.000000e+00> : vector<8x512xf32>
    %160 = tpu.matmul %159, %156, %cst_36 {dimension_numbers = #tpu.dot_dimension_numbers<[1], [0], [0], [1], [0, 0, 1, 1], [], []>} : vector<8x128xbf16>, vector<128x512xbf16>, vector<8x512xf32> -> vector<8x512xf32>
    %161 = arith.addf %155, %160 : vector<8x512xf32>
    %162 = vector.extract_strided_slice %161 {offsets = [0, 0], sizes = [8, 384], strides = [1, 1]} : vector<8x512xf32> to vector<8x384xf32>
    %163 = arith.negf %162 : vector<8x384xf32>
    %164 = math.exp %163 : vector<8x384xf32>
    %cst_37 = arith.constant 1.000000e+00 : f32
    %165 = vector.broadcast %cst_37 : f32 to vector<8x384xf32>
    %166 = arith.addf %165, %164 : vector<8x384xf32>
    %167 = arith.divf %165, %166 : vector<8x384xf32>
    %168 = vector.extract_strided_slice %167 {offsets = [0, 0], sizes = [8, 128], strides = [1, 1]} : vector<8x384xf32> to vector<8x128xf32>
    %169 = vector.extract_strided_slice %167 {offsets = [0, 128], sizes = [8, 128], strides = [1, 1]} : vector<8x384xf32> to vector<8x128xf32>
    %170 = vector.extract_strided_slice %167 {offsets = [0, 256], sizes = [8, 128], strides = [1, 1]} : vector<8x384xf32> to vector<8x128xf32>
    %171 = vector.extract_strided_slice %161 {offsets = [0, 384], sizes = [8, 128], strides = [1, 1]} : vector<8x512xf32> to vector<8x128xf32>
    %172 = math.tanh %171 : vector<8x128xf32>
    %173 = arith.mulf %169, %158 : vector<8x128xf32>
    %174 = arith.mulf %168, %172 : vector<8x128xf32>
    %175 = arith.addf %173, %174 : vector<8x128xf32>
    %176 = math.tanh %175 : vector<8x128xf32>
    %177 = arith.mulf %170, %176 : vector<8x128xf32>
    %178 = arith.truncf %177 : vector<8x128xf32> to vector<8x128xbf16>
    %cst_38 = arith.constant dense<0.000000e+00> : vector<8x512xf32>
    %179 = tpu.matmul %178, %156, %cst_38 {dimension_numbers = #tpu.dot_dimension_numbers<[1], [0], [0], [1], [0, 0, 1, 1], [], []>} : vector<8x128xbf16>, vector<128x512xbf16>, vector<8x512xf32> -> vector<8x512xf32>
    %180 = arith.addf %155, %179 : vector<8x512xf32>
    %181 = vector.extract_strided_slice %180 {offsets = [0, 0], sizes = [8, 384], strides = [1, 1]} : vector<8x512xf32> to vector<8x384xf32>
    %182 = arith.negf %181 : vector<8x384xf32>
    %183 = math.exp %182 : vector<8x384xf32>
    %cst_39 = arith.constant 1.000000e+00 : f32
    %184 = vector.broadcast %cst_39 : f32 to vector<8x384xf32>
    %185 = arith.addf %184, %183 : vector<8x384xf32>
    %186 = arith.divf %184, %185 : vector<8x384xf32>
    %187 = vector.extract_strided_slice %186 {offsets = [0, 0], sizes = [8, 128], strides = [1, 1]} : vector<8x384xf32> to vector<8x128xf32>
    %188 = vector.extract_strided_slice %186 {offsets = [0, 128], sizes = [8, 128], strides = [1, 1]} : vector<8x384xf32> to vector<8x128xf32>
    %189 = vector.extract_strided_slice %186 {offsets = [0, 256], sizes = [8, 128], strides = [1, 1]} : vector<8x384xf32> to vector<8x128xf32>
    %190 = vector.extract_strided_slice %180 {offsets = [0, 384], sizes = [8, 128], strides = [1, 1]} : vector<8x512xf32> to vector<8x128xf32>
    %191 = math.tanh %190 : vector<8x128xf32>
    %192 = arith.mulf %188, %175 : vector<8x128xf32>
    %193 = arith.mulf %187, %191 : vector<8x128xf32>
    %194 = arith.addf %192, %193 : vector<8x128xf32>
    %195 = math.tanh %194 : vector<8x128xf32>
    %196 = arith.mulf %189, %195 : vector<8x128xf32>
    %197 = arith.truncf %196 : vector<8x128xf32> to vector<8x128xbf16>
    %cst_40 = arith.constant dense<0.000000e+00> : vector<8x512xf32>
    %198 = tpu.matmul %197, %156, %cst_40 {dimension_numbers = #tpu.dot_dimension_numbers<[1], [0], [0], [1], [0, 0, 1, 1], [], []>} : vector<8x128xbf16>, vector<128x512xbf16>, vector<8x512xf32> -> vector<8x512xf32>
    %199 = arith.addf %155, %198 : vector<8x512xf32>
    %200 = vector.extract_strided_slice %199 {offsets = [0, 0], sizes = [8, 384], strides = [1, 1]} : vector<8x512xf32> to vector<8x384xf32>
    %201 = arith.negf %200 : vector<8x384xf32>
    %202 = math.exp %201 : vector<8x384xf32>
    %cst_41 = arith.constant 1.000000e+00 : f32
    %203 = vector.broadcast %cst_41 : f32 to vector<8x384xf32>
    %204 = arith.addf %203, %202 : vector<8x384xf32>
    %205 = arith.divf %203, %204 : vector<8x384xf32>
    %206 = vector.extract_strided_slice %205 {offsets = [0, 0], sizes = [8, 128], strides = [1, 1]} : vector<8x384xf32> to vector<8x128xf32>
    %207 = vector.extract_strided_slice %205 {offsets = [0, 128], sizes = [8, 128], strides = [1, 1]} : vector<8x384xf32> to vector<8x128xf32>
    %208 = vector.extract_strided_slice %205 {offsets = [0, 256], sizes = [8, 128], strides = [1, 1]} : vector<8x384xf32> to vector<8x128xf32>
    %209 = vector.extract_strided_slice %199 {offsets = [0, 384], sizes = [8, 128], strides = [1, 1]} : vector<8x512xf32> to vector<8x128xf32>
    %210 = math.tanh %209 : vector<8x128xf32>
    %211 = arith.mulf %207, %194 : vector<8x128xf32>
    %212 = arith.mulf %206, %210 : vector<8x128xf32>
    %213 = arith.addf %211, %212 : vector<8x128xf32>
    %214 = math.tanh %213 : vector<8x128xf32>
    %215 = arith.mulf %208, %214 : vector<8x128xf32>
    %216 = arith.truncf %215 : vector<8x128xf32> to vector<8x128xbf16>
    %cst_42 = arith.constant dense<0.000000e+00> : vector<8x512xf32>
    %217 = tpu.matmul %216, %156, %cst_42 {dimension_numbers = #tpu.dot_dimension_numbers<[1], [0], [0], [1], [0, 0, 1, 1], [], []>} : vector<8x128xbf16>, vector<128x512xbf16>, vector<8x512xf32> -> vector<8x512xf32>
    %218 = arith.addf %155, %217 : vector<8x512xf32>
    %219 = vector.extract_strided_slice %218 {offsets = [0, 0], sizes = [8, 384], strides = [1, 1]} : vector<8x512xf32> to vector<8x384xf32>
    %220 = arith.negf %219 : vector<8x384xf32>
    %221 = math.exp %220 : vector<8x384xf32>
    %cst_43 = arith.constant 1.000000e+00 : f32
    %222 = vector.broadcast %cst_43 : f32 to vector<8x384xf32>
    %223 = arith.addf %222, %221 : vector<8x384xf32>
    %224 = arith.divf %222, %223 : vector<8x384xf32>
    %225 = vector.extract_strided_slice %224 {offsets = [0, 0], sizes = [8, 128], strides = [1, 1]} : vector<8x384xf32> to vector<8x128xf32>
    %226 = vector.extract_strided_slice %224 {offsets = [0, 128], sizes = [8, 128], strides = [1, 1]} : vector<8x384xf32> to vector<8x128xf32>
    %227 = vector.extract_strided_slice %224 {offsets = [0, 256], sizes = [8, 128], strides = [1, 1]} : vector<8x384xf32> to vector<8x128xf32>
    %228 = vector.extract_strided_slice %218 {offsets = [0, 384], sizes = [8, 128], strides = [1, 1]} : vector<8x512xf32> to vector<8x128xf32>
    %229 = math.tanh %228 : vector<8x128xf32>
    %230 = arith.mulf %226, %213 : vector<8x128xf32>
    %231 = arith.mulf %225, %229 : vector<8x128xf32>
    %232 = arith.addf %230, %231 : vector<8x128xf32>
    %233 = math.tanh %232 : vector<8x128xf32>
    %234 = arith.mulf %227, %233 : vector<8x128xf32>
    %235 = arith.truncf %234 : vector<8x128xf32> to vector<8x128xbf16>
    %cst_44 = arith.constant dense<0.000000e+00> : vector<8x512xf32>
    %236 = tpu.matmul %235, %156, %cst_44 {dimension_numbers = #tpu.dot_dimension_numbers<[1], [0], [0], [1], [0, 0, 1, 1], [], []>} : vector<8x128xbf16>, vector<128x512xbf16>, vector<8x512xf32> -> vector<8x512xf32>
    %237 = arith.addf %155, %236 : vector<8x512xf32>
    %238 = vector.extract_strided_slice %237 {offsets = [0, 0], sizes = [8, 384], strides = [1, 1]} : vector<8x512xf32> to vector<8x384xf32>
    %239 = arith.negf %238 : vector<8x384xf32>
    %240 = math.exp %239 : vector<8x384xf32>
    %cst_45 = arith.constant 1.000000e+00 : f32
    %241 = vector.broadcast %cst_45 : f32 to vector<8x384xf32>
    %242 = arith.addf %241, %240 : vector<8x384xf32>
    %243 = arith.divf %241, %242 : vector<8x384xf32>
    %244 = vector.extract_strided_slice %243 {offsets = [0, 0], sizes = [8, 128], strides = [1, 1]} : vector<8x384xf32> to vector<8x128xf32>
    %245 = vector.extract_strided_slice %243 {offsets = [0, 128], sizes = [8, 128], strides = [1, 1]} : vector<8x384xf32> to vector<8x128xf32>
    %246 = vector.extract_strided_slice %243 {offsets = [0, 256], sizes = [8, 128], strides = [1, 1]} : vector<8x384xf32> to vector<8x128xf32>
    %247 = vector.extract_strided_slice %237 {offsets = [0, 384], sizes = [8, 128], strides = [1, 1]} : vector<8x512xf32> to vector<8x128xf32>
    %248 = math.tanh %247 : vector<8x128xf32>
    %249 = arith.mulf %245, %232 : vector<8x128xf32>
    %250 = arith.mulf %244, %248 : vector<8x128xf32>
    %251 = arith.addf %249, %250 : vector<8x128xf32>
    %252 = math.tanh %251 : vector<8x128xf32>
    %253 = arith.mulf %246, %252 : vector<8x128xf32>
    %254 = tpu.concatenate %177, %196, %215, %234, %253 in 0 : vector<8x128xf32>, vector<8x128xf32>, vector<8x128xf32>, vector<8x128xf32>, vector<8x128xf32> -> vector<40x128xf32>
    %c0_46 = arith.constant 0 : index
    %c0_47 = arith.constant 0 : index
    %255 = vector.load %arg11[%c0_46, %c0_47] : memref<128x3xf32, #tpu.memory_space<vmem>>, vector<128x3xf32>
    %cst_48 = arith.constant dense<0.000000e+00> : vector<40x3xf32>
    %256 = tpu.matmul %254, %255, %cst_48 {dimension_numbers = #tpu.dot_dimension_numbers<[1], [0], [0], [1], [0, 0, 1, 1], [], []>} : vector<40x128xf32>, vector<128x3xf32>, vector<40x3xf32> -> vector<40x3xf32>
    %c0_49 = arith.constant 0 : index
    %c0_50 = arith.constant 0 : index
    %257 = vector.load %arg12[%c0_49, %c0_50] : memref<1x3xf32, #tpu.memory_space<vmem>>, vector<1x3xf32>
    %258 = vector.broadcast %257 : vector<1x3xf32> to vector<40x3xf32>
    %259 = arith.addf %256, %258 : vector<40x3xf32>
    %c0_51 = arith.constant 0 : index
    %c0_52 = arith.constant 0 : index
    %260 = vector.load %arg1[%c0_51, %c0_52] : memref<40x1xf32, #tpu.memory_space<vmem>>, vector<40x1xf32>
    %261 = vector.broadcast %260 : vector<40x1xf32> to vector<40x3xf32>
    %262 = arith.mulf %259, %261 : vector<40x3xf32>
    %c0_53 = arith.constant 0 : index
    %c0_54 = arith.constant 0 : index
    %263 = vector.load %arg13[%c0_53, %c0_54] : memref<40x3xf32, #tpu.memory_space<vmem>>, vector<40x3xf32>
    tpu.vector_store %arg13[%c0_53, %c0_54], %262 {strides = array<i32>} : memref<40x3xf32, #tpu.memory_space<vmem>>, vector<40x3xf32>,
    return
  }
}

</mosaic_0001>

<bundles_post_ra>
// kernel: vae_forward.1
= control target key start
LH: loop header
LB: loop body
LE: loop exit
PB: predicated region body
PF: predicated region fallthrough
CT: control target
= control target key end

     0   :  { %20 = vsyncpa [#allocation3], 0  ;;  %s2837_s29 = smov [#allocation2]   ;;  %s3972_s0 = inlined_call_operand.vmem [shape: f32[40,3], index: 0, kind: input, shape index: {}]   ;;  %s3973_s1 = inlined_call_operand.vmem [shape: f32[40,1], index: 1, kind: input, shape index: {}]   ;;  %s3974_s2 = inlined_call_operand.vmem [shape: f32[8,2], index: 2, kind: input, shape index: {}]   ;;  %s3975_s3 = inlined_call_operand.vmem [shape: f32[3,512], index: 3, kind: input, shape index: {}]   ;;  %s3976_s4 = inlined_call_operand.vmem [shape: bf16[128,512], index: 4, kind: input, shape index: {}]   ;;  %s3977_s5 = inlined_call_operand.vmem [shape: f32[1,512], index: 5, kind: input, shape index: {}]   ;;  %s3978_s6 = inlined_call_operand.vmem [shape: f32[128,4], index: 6, kind: input, shape index: {}]   ;;  %s3979_s7 = inlined_call_operand.vmem [shape: f32[1,4], index: 7, kind: input, shape index: {}]   ;;  %s3980_s8 = inlined_call_operand.vmem [shape: f32[2,512], index: 8, kind: input, shape index: {}]   ;;  %s3981_s9 = inlined_call_operand.hbm [shape: bf16[128,512], index: 9, kind: input, shape index: {}]   ;;  %s3982_s10 = inlined_call_operand.vmem [shape: f32[1,512], index: 10, kind: input, shape index: {}]   ;;  %s3983_s11 = inlined_call_operand.vmem [shape: f32[128,3], index: 11, kind: input, shape index: {}]   ;;  %s3984_s12 = inlined_call_operand.vmem [shape: f32[1,3], index: 12, kind: input, shape index: {}]   ;;  %s3985_s13 = inlined_call_operand.vmem [shape: f32[40,3], index: 13, kind: output, shape index: {0}]   ;;  %s3986_s14 = inlined_call_operand.vmem [shape: f32[8,4], index: 14, kind: output, shape index: {1}]  }
   0x1   :  { %s44_s30 = sshll.u32 %s2837_s29, 4  ;;  %s2813_s17 = scalar_lea.hbm %s3981_s9, 4096  ;;  %s45_s30 = int_to_ptr.vmem [resolvable:$true] %s44_s30 }
   0x2   :  { %p2814_p0 = scmp.ne.s32.totalorder %s3981_s9, %s2813_s17  ;;  %p2817_p1 = scmp.lt.u32.totalorder %s2813_s17, %s3981_s9 }
   0x4   :  { %p2819_p2 = pnand %p2817_p1, %p2814_p0 }
   0x6   :  { %2822 = shalt.err (!%p2819_p2)
}
   0x7   :  { %s2823_s22 = scalar_lea.vmem %s45_s30, 4096  ;;  %p2828_p4 = scmp.lt.s32.totalorder %s45_s30, %s45_s30 }
   0x8   :  { %p2824_p3 = scmp.ne.s32.totalorder %s45_s30, %s2823_s22  ;;  %p2829_p5 = scmp.lt.s32.totalorder %s2823_s22, %s2823_s22 }
   0xa   :  { %p2830_p6 = por %p2829_p5, %p2828_p4 }
   0xc   :  { %p2831_p7 = pnand %p2830_p6, %p2824_p3 }
   0xe   :  { %2834 = shalt.err (!%p2831_p7)
}
   0xf   :  { %s2838_s23 = smov 256   ;;  %s2839_s24 = smov 16  }
  0x10   :  { %50 = dma.hbm_to_vmem [thread:$0]  %s3981_s9, 4096, %s45_s30, [#allocation3], %s2838_s23, %s2838_s23, %s2839_s24  }
  0x11   :  { %2835 = dma.done.wait [#allocation3], 4096  }
  0x12   :  { %2836 = vsyncadd [#allocation3], 4294963200  ;;  %v3989_v0 = vmov 0   ;;  %v3987_v1 = vmov 2   ;;  %v2941_v2 = vld [vmem:[%s3976_s4 + $0x4] ss:$16 sps:$4 sm:$0xff]   ;;  %v70_v38 = vlaneseq }
  0x13   :  { %609 = vmatprep.mubr.bf16.mxu0 %v3989_v0  ;;  %650 = vmatprep.mubr.bf16.mxu1 %v3989_v0  ;;  %4045 = vst [vmem:[#allocation5_spill] sm:$0xff] %v2941_v2  ;;  %v2946_v3 = vld [vmem:[%s3976_s4 + $0xc] ss:$16 sps:$4 sm:$0xff]   ;;  %v2952_v4 = vld [vmem:[%s3976_s4] ss:$16 sps:$4 sm:$0xff]   ;;  %v2842_v34 = vmov 1  }
  0x14   :  { %2540 = vset.pattern.permute.xlu0 %v3989_v0  ;;  %2542 = vset.pattern.permute.xlu1 %v3987_v1  ;;  %4046 = vst [vmem:[#allocation6_spill] sm:$0xff] %v2946_v3  ;;  %v2957_v5 = vld [vmem:[%s3976_s4 + $0x8] ss:$16 sps:$4 sm:$0xff]   ;;  %v2963_v6 = vld [vmem:[%s3976_s4 + $0x24] ss:$16 sps:$4 sm:$0xff]   ;;  %v3181_v39 = vshrl.u32 %v70_v38, 7 }
  0x15   :  { %577 = vmatprep.subr.bf16.mxu0 %v2941_v2  ;;  %618 = vmatprep.subr.bf16.mxu1 %v2946_v3  ;;  %v2970_v7 = vld [vmem:[%s3976_s4 + $0x2c] ss:$16 sps:$4 sm:$0xff]   ;;  %v2975_v8 = vld [vmem:[%s3976_s4 + $0x20] ss:$16 sps:$4 sm:$0xff]   ;;  %v2981_v9 = vld [vmem:[%s3976_s4 + $0x28] ss:$16 sps:$4 sm:$0xff]  }
  0x16   :  { %578 = vmatpush1.bf16.msra.mxu0 %v2952_v4  ;;  %619 = vmatpush1.bf16.msra.mxu1 %v2957_v5  ;;  %v2987_v10 = vld [vmem:[%s3976_s4 + $0x44] ss:$16 sps:$4 sm:$0xff]   ;;  %v2992_v11 = vld [vmem:[%s3976_s4 + $0x4c] ss:$16 sps:$4 sm:$0xff]   ;;  %v2997_v12 = vld [vmem:[%s3976_s4 + $0x40] ss:$16 sps:$4 sm:$0xff]  }
  0x17   :  { %579 = vmatprep.subr.bf16.mxu0 %v2963_v6  ;;  %620 = vmatprep.subr.bf16.mxu1 %v2970_v7  ;;  %v3002_v13 = vld [vmem:[%s3976_s4 + $0x48] ss:$16 sps:$4 sm:$0xff]   ;;  %v3009_v14 = vld [vmem:[%s3976_s4 + $0x64] ss:$16 sps:$4 sm:$0xff]   ;;  %v3016_v15 = vld [vmem:[%s3976_s4 + $0x6c] ss:$16 sps:$4 sm:$0xff]  }
  0x18   :  { %v3021_v16 = vld [vmem:[%s3976_s4 + $0x60] ss:$16 sps:$4 sm:$0xff]   ;;  %v3028_v17 = vld [vmem:[%s3976_s4 + $0x68] ss:$16 sps:$4 sm:$0xff]   ;;  %v3033_v18 = vld [vmem:[%s3976_s4 + $0x84] ss:$16 sps:$4 sm:$0xff]  }
  0x19   :  { %v3040_v19 = vld [vmem:[%s3976_s4 + $0x8c] ss:$16 sps:$4 sm:$0xff]   ;;  %v3045_v20 = vld [vmem:[%s3976_s4 + $0x80] ss:$16 sps:$4 sm:$0xff]   ;;  %v3050_v21 = vld [vmem:[%s3976_s4 + $0x88] ss:$16 sps:$4 sm:$0xff]  }
  0x1a   :  { %580 = vmatpush1.bf16.msra.mxu0 %v2975_v8  ;;  %621 = vmatpush1.bf16.msra.mxu1 %v2981_v9  ;;  %v3057_v22 = vld [vmem:[%s3976_s4 + $0xa4] ss:$16 sps:$4 sm:$0xff]   ;;  %v3064_v23 = vld [vmem:[%s3976_s4 + $0xac] ss:$16 sps:$4 sm:$0xff]   ;;  %v3071_v24 = vld [vmem:[%s3976_s4 + $0xa0] ss:$16 sps:$4 sm:$0xff]  }
  0x1b   :  { %581 = vmatprep.subr.bf16.mxu0 %v2987_v10  ;;  %622 = vmatprep.subr.bf16.mxu1 %v2992_v11  ;;  %v3076_v25 = vld [vmem:[%s3976_s4 + $0xa8] ss:$16 sps:$4 sm:$0xff]   ;;  %v3083_v26 = vld [vmem:[%s3976_s4 + $0xc4] ss:$16 sps:$4 sm:$0xff]   ;;  %v3088_v27 = vld [vmem:[%s3976_s4 + $0xcc] ss:$16 sps:$4 sm:$0xff]  }
  0x1c   :  { %v61_v28 = vld [vmem:[%s3972_s0] sm:$0xff]  ;;  %v3101_v30 = vld [vmem:[%s3976_s4 + $0xc8] ss:$16 sps:$4 sm:$0xff]   ;;  %v3111_v32 = vld [vmem:[%s3976_s4 + $0xec] ss:$16 sps:$4 sm:$0xff]   ;;  %4047 = vst [vmem:[#allocation7_spill] sm:$0xff] %v3181_v39 }
  0x1d   :  { %v3096_v29 = vld [vmem:[%s3976_s4 + $0xc0] ss:$16 sps:$4 sm:$0xff]   ;;  %92 = vperm.xlu0 %2540, %v61_v28   ;;  %290 = vperm.xlu1 %2542, %v61_v28   ;;  %v3106_v31 = vld [vmem:[%s3976_s4 + $0xe4] ss:$16 sps:$4 sm:$0xff]   ;;  %v3126_v35 = vld [vmem:[%s3976_s4 + $0xe8] ss:$16 sps:$4 sm:$0xff]  }
  0x1e   :  { %582 = vmatpush1.bf16.msra.mxu0 %v2997_v12  ;;  %623 = vmatpush1.bf16.msra.mxu1 %v3002_v13  ;;  %v3120_v33 = vld [vmem:[%s3976_s4 + $0xe0] ss:$16 sps:$4 sm:$0xff]   ;;  %v62_v36 = vld [vmem:[%s3972_s0 + $0x8] sm:$0xff]  ;;  %v3184_v40 = vsub.s32 0, %v3181_v39  ;;  %v3190_v42 = vsub.s32 4, %v3181_v39  ;;  %v3193_v43 = vsub.s32 1, %v3181_v39 }
  0x1f   :  { %583 = vmatprep.subr.bf16.mxu0 %v3009_v14  ;;  %624 = vmatprep.subr.bf16.mxu1 %v3016_v15  ;;  %v63_v37 = vld [vmem:[%s3972_s0 + $0x10] sm:$0xff]  ;;  %v66_v41 = vld [vmem:[%s3975_s3] sm:$0x77]  ;;  %v3198_v46 = vsub.s32 5, %v3181_v39  ;;  %v67_v48 = vld [vmem:[%s3975_s3 + $0x8] sm:$0x77] }
  0x20   :  { %4048 = vst [vmem:[#allocation8_spill] sm:$0xff] %v3184_v40  ;;  %4049 = vst [vmem:[#allocation9_spill] sm:$0xff] %v3190_v42  ;;  %v120_v44 = vrot.slane %v66_v41, %v3184_v40  ;;  %v124_v45 = vrot.slane %v66_v41, %v3190_v42  ;;  %v216_v50 = vrot.slane %v66_v41, %v3193_v43  ;;  %v3208_v51 = vsub.s32 2, %v3181_v39  ;;  %v68_v54 = vld [vmem:[%s3977_s5] sm:$0xf]  ;;  %s2846_s9 = smov 126  }
  0x21   :  { %2541 = vset.pattern.permute.xlu0 %v2842_v34  ;;  %2543 = vset.pattern.permute.xlu1 %v3989_v0  ;;  %4050 = vst [vmem:[#allocation10_spill] sm:$0xff] %v3193_v43  ;;  %4051 = vst [vmem:[#allocation11_spill] sm:$0xff] %v3198_v46  ;;  %v220_v53 = vrot.slane %v66_v41, %v3198_v46  ;;  %v3218_v55 = vsub.s32 6, %v3181_v39  ;;  %v128_v56 = vrot.slane %v67_v48, %v3184_v40  ;;  %vm2844_vm0 = vmmov 0  }
  0x22   :  { %584 = vmatpush1.bf16.msra.mxu0 %v3021_v16  ;;  %625 = vmatpush1.bf16.msra.mxu1 %v3028_v17  ;;  %v3204_v49 = vrot.slane %v120_v44, %v3184_v40  ;;  %4053 = vst [vmem:[#allocation13_spill] sm:$0xff] %v3208_v51  ;;  %v3211_v52 = vrot.slane %v124_v45, %v3184_v40  ;;  %vm1234_vm1 = vcmask 31744   ;;  %vm2251_vm2 = vcmask 23552  }
  0x23   :  { %585 = vmatprep.subr.bf16.mxu0 %v3033_v18  ;;  %626 = vmatprep.subr.bf16.mxu1 %v3040_v19  ;;  %4055 = vst [vmem:[#allocation15_spill] sm:$0xff] %v3218_v55  ;;  %v3223_v58 = vrot.slane %v216_v50, %v3193_v43  ;;  %v3226_v59 = vrot.slane %v68_v54, %v3184_v40 }
  0x24   :  { %194 = vperm.xlu0 %2541, %v61_v28   ;;  %97 = vperm.xlu1 %2543, %v62_v36   ;;  %4052 = vst [vmem:[#allocation12_spill] sm:$0xff] %v3204_v49  ;;  %4054 = vst [vmem:[#allocation14_spill] sm:$0xff] %v3211_v52  ;;  %v312_v60 = vrot.slane %v66_v41, %v3208_v51  ;;  %v3231_v62 = vrot.slane %v220_v53, %v3193_v43 }
  0x25   :  { %4056 = vst [vmem:[#allocation16_spill] sm:$0xff] %v3223_v58  ;;  %4057 = vst [vmem:[#allocation17_spill] sm:$0xff] %v3226_v59  ;;  %v3234_v28 = vrot.slane %v68_v54, %v3193_v43  ;;  %v3240_v38 = vrot.slane %v128_v56, %v3184_v40  ;;  %v228_v56 = vrot.slane %v67_v48, %v3198_v46 }
  0x26   :  { %586 = vmatpush1.bf16.msra.mxu0 %v3045_v20  ;;  %627 = vmatpush1.bf16.msra.mxu1 %v3050_v21  ;;  %4058 = vst [vmem:[#allocation18_spill] sm:$0xff] %v3231_v62  ;;  %v3245_v50 = vrot.slane %v312_v60, %v3208_v51  ;;  %v3263_v60 = vsub.s32 3, %v3181_v39  ;;  %v324_v39 = vrot.slane %v67_v48, %v3218_v55 }
  0x27   :  { %587 = vmatprep.subr.bf16.mxu0 %v3057_v22  ;;  %628 = vmatprep.subr.bf16.mxu1 %v3064_v23  ;;  %4059 = vst [vmem:[#allocation19_spill] sm:$0xff] %v3234_v28  ;;  %4060 = vst [vmem:[#allocation20_spill] sm:$0xff] %v3240_v38 }
  0x28   :  { %2545 = vset.pattern.permute.xlu0 %v3987_v1  ;;  %2544 = vset.pattern.permute.xlu1 %v2842_v34  ;;  %4061 = vst [vmem:[#allocation21_spill] sm:$0xff] %v3245_v50  ;;  %4066 = vst [vmem:[#allocation26_spill] sm:$0xff] %v3263_v60 }
  0x29   :  { %294 = vperm.xlu0 %2545, %v62_v36   ;;  %198 = vperm.xlu1 %2544, %v62_v36   ;;  %v132_v36 = vrot.slane %v67_v48, %v3190_v42 }
  0x2a   :  { %588 = vmatpush1.bf16.msra.mxu0 %v3071_v24  ;;  %629 = vmatpush1.bf16.msra.mxu1 %v3076_v25 }
  0x2b   :  { %589 = vmatprep.subr.bf16.mxu0 %v3083_v26  ;;  %630 = vmatprep.subr.bf16.mxu1 %v3088_v27  ;;  %v3253_v42 = vrot.slane %v132_v36, %v3184_v40 }
  0x2d   :  { %298 = vperm.xlu0 %2545, %v63_v37   ;;  %2546 = vset.pattern.permute.xlu1 %v3989_v0  ;;  %4063 = vst [vmem:[#allocation23_spill] sm:$0xff] %v3253_v42 }
  0x2e   :  { %590 = vmatpush1.bf16.msra.mxu0 %v3096_v29  ;;  %631 = vmatpush1.bf16.msra.mxu1 %v3101_v30 }
  0x2f   :  { %591 = vmatprep.subr.bf16.mxu0 %v3106_v31  ;;  %632 = vmatprep.subr.bf16.mxu1 %v3111_v32 }
  0x30   :  { %102 = vperm.xlu1 %2546, %v63_v37  }
  0x31   :  { %2549 = vset.pattern.permute.xlu0 %v2842_v34 }
  0x32   :  { %592 = vmatpush1.bf16.msra.mxu0 %v3120_v33  ;;  %633 = vmatpush1.bf16.msra.mxu1 %v3126_v35 }
  0x33   :  { %688 = vmatprep.subr.bf16.mxu0 %v2941_v2  ;;  %729 = vmatprep.subr.bf16.mxu1 %v2946_v3 }
  0x34   :  { %2547 = vset.pattern.permute.xlu1 %v2842_v34  ;;  %v316_v34 = vrot.slane %v66_v41, %v3218_v55 }
  0x35   :  { %610 = vmatmul.mubr.bf16.vlgmr.msra.gmra.mrb[0].mxu0 %v3989_v0  ;;  %651 = vmatmul.mubr.bf16.vlgmr.msra.gmra.mrb[0].mxu1 %v3989_v0 }
  0x36   :  { %689 = vmatpush1.bf16.msra.mxu0 %v2952_v4  ;;  %730 = vmatpush1.bf16.msra.mxu1 %v2957_v5  ;;  %v3250_v41 = vrot.slane %v316_v34, %v3208_v51 }
  0x37   :  { %690 = vmatprep.subr.bf16.mxu0 %v2963_v6  ;;  %731 = vmatprep.subr.bf16.mxu1 %v2970_v7 }
  0x38   :  { %720 = vmatprep.mubr.bf16.mxu0 %v3989_v0  ;;  %761 = vmatprep.mubr.bf16.mxu1 %v3989_v0  ;;  %4062 = vst [vmem:[#allocation22_spill] sm:$0xff] %v3250_v41 }
  0x39   :  { %202 = vperm.xlu1 %2547, %v63_v37   ;;  %v224_v37 = vrot.slane %v67_v48, %v3193_v43 }
  0x3a   :  { %691 = vmatpush1.bf16.msra.mxu0 %v2975_v8  ;;  %732 = vmatpush1.bf16.msra.mxu1 %v2981_v9 }
  0x3b   :  { %692 = vmatprep.subr.bf16.mxu0 %v2987_v10  ;;  %733 = vmatprep.subr.bf16.mxu1 %v2992_v11 }
  0x3d   :  { %2548 = vset.pattern.permute.xlu1 %v3989_v0 }
  0x3e   :  { %693 = vmatpush1.bf16.msra.mxu0 %v2997_v12  ;;  %734 = vmatpush1.bf16.msra.mxu1 %v3002_v13 }
  0x3f   :  { %694 = vmatprep.subr.bf16.mxu0 %v3009_v14  ;;  %735 = vmatprep.subr.bf16.mxu1 %v3016_v15 }
  0x42   :  { %695 = vmatpush1.bf16.msra.mxu0 %v3021_v16  ;;  %736 = vmatpush1.bf16.msra.mxu1 %v3028_v17 }
  0x43   :  { %696 = vmatprep.subr.bf16.mxu0 %v3033_v18  ;;  %737 = vmatprep.subr.bf16.mxu1 %v3040_v19 }
  0x46   :  { %697 = vmatpush1.bf16.msra.mxu0 %v3045_v20  ;;  %738 = vmatpush1.bf16.msra.mxu1 %v3050_v21 }
  0x47   :  { %698 = vmatprep.subr.bf16.mxu0 %v3057_v22  ;;  %739 = vmatprep.subr.bf16.mxu1 %v3064_v23 }
  0x4a   :  { %699 = vmatpush1.bf16.msra.mxu0 %v3071_v24  ;;  %740 = vmatpush1.bf16.msra.mxu1 %v3076_v25 }
  0x4b   :  { %700 = vmatprep.subr.bf16.mxu0 %v3083_v26  ;;  %741 = vmatprep.subr.bf16.mxu1 %v3088_v27 }
  0x4e   :  { %701 = vmatpush1.bf16.msra.mxu0 %v3096_v29  ;;  %742 = vmatpush1.bf16.msra.mxu1 %v3101_v30 }
  0x4f   :  { %702 = vmatprep.subr.bf16.mxu0 %v3106_v31  ;;  %743 = vmatprep.subr.bf16.mxu1 %v3111_v32 }
  0x52   :  { %703 = vmatpush1.bf16.msra.mxu0 %v3120_v33  ;;  %744 = vmatpush1.bf16.msra.mxu1 %v3126_v35 }
  0x53   :  { %799 = vmatprep.subr.bf16.mxu0 %v2941_v2  ;;  %840 = vmatprep.subr.bf16.mxu1 %v2946_v3 }
  0x9c   :  { %v93_v47 = vpop.permute.xlu0 %92  ;;  %v291_v1 = vpop.permute.xlu1 %290 }
  0x9d   :  { %v153_v57 = vmul.f32 %v3204_v49, %v93_v47  ;;  %v154_v61 = vmul.f32 %v3211_v52, %v93_v47  ;;  %v345_v34 = vmul.f32 %v3245_v50, %v291_v1  ;;  %v346_v40 = vmul.f32 %v3250_v41, %v291_v1 }
  0x9e   :  { %v156_v46 = vmul.f32 %v3253_v42, %v93_v47 }
  0x9f   :  { %v173_v45 = vadd.f32 %v153_v57, %v3226_v59  ;;  %v174_v0 = vadd.f32 %v154_v61, %v3234_v28  ;;  %v3260_v57 = vrot.slane %v68_v54, %v3208_v51  ;;  %v320_v28 = vrot.slane %v67_v48, %v3208_v51 }
  0xa0   :  { %v3274_v59 = vrot.slane %v68_v54, %v3263_v60  ;;  %v3285_v48 = vrot.slane %v324_v39, %v3208_v51 }
  0xa1   :  { %4065 = vst [vmem:[#allocation25_spill] sm:$0xff] %v3260_v57  ;;  %v3280_v50 = vrot.slane %v320_v28, %v3208_v51 }
  0xa2   :  { %v176_v60 = vadd.f32 %v156_v46, %v3274_v59 }
  0xa3   :  { %v195_v63 = vpop.permute.xlu0 %194  ;;  %v347_v28 = vmul.f32 %v3280_v50, %v291_v1 }
  0xa4   :  { %v249_v44 = vmul.f32 %v3223_v58, %v195_v63  ;;  %v250_v53 = vmul.f32 %v3231_v62, %v195_v63  ;;  %v3257_v58 = vrot.slane %v224_v37, %v3193_v43  ;;  %v155_v62 = vmul.f32 %v3240_v38, %v93_v47 }
  0xa5   :  { %v3271_v37 = vrot.slane %v228_v56, %v3193_v43 }
  0xa6   :  { %4064 = vst [vmem:[#allocation24_spill] sm:$0xff] %v3257_v58  ;;  %v269_v61 = vadd.f32 %v249_v44, %v173_v45  ;;  %v270_v36 = vadd.f32 %v250_v53, %v174_v0  ;;  %v251_v38 = vmul.f32 %v3257_v58, %v195_v63  ;;  %v175_v45 = vadd.f32 %v155_v62, %v3260_v57 }
  0xa7   :  { %v252_v43 = vmul.f32 %v3271_v37, %v195_v63 }
  0xa8   :  { %v365_v44 = vadd.f32 %v345_v34, %v269_v61  ;;  %v366_v41 = vadd.f32 %v346_v40, %v270_v36  ;;  %v271_v55 = vadd.f32 %v251_v38, %v175_v45 }
  0xa9   :  { %v272_v36 = vadd.f32 %v252_v43, %v176_v60 }
  0xaa   :  { %v367_v63 = vadd.f32 %v347_v28, %v271_v55  ;;  %v4067_v28 = vmov 0  }
  0xad   :  { %v4076_v51 = vld [vmem:[#allocation24_spill] sm:$0xff] }
 0x108   :  { %v611_v0 = vpop.f32.mrb[0].mxu0  ;;  %v652_v53 = vpop.f32.mrb[0].mxu1 }
 0x109   :  { %v659_v47 = vadd.f32 %v611_v0, %v365_v44  ;;  %v613_v42 = vpop.f32.mrb[1].mxu0  ;;  %v654_v56 = vpop.f32.mrb[1].mxu1  ;;  %v348_v44 = vmul.f32 %v3285_v48, %v291_v1 }
 0x10a   :  { %v660_v54 = vadd.f32 %v613_v42, %v366_v41  ;;  %v615_v61 = vpop.f32.mrb[2].mxu0  ;;  %v656_v34 = vpop.f32.mrb[2].mxu1  ;;  %v661_v42 = vadd.f32 %v652_v53, %v367_v63 }
 0x10b   :  { %v2298_v62 = vmul.f32 -1.442695, %v659_v47  ;;  %v616_v57 = vpop.f32.mrb[3].mxu0  ;;  %v657_v58 = vpop.f32.mrb[3].mxu1  ;;  %v368_v46 = vadd.f32 %v348_v44, %v272_v36 }
 0x10c   :  { %v2299_v40 = vmul.f32 -1.442695, %v660_v54  ;;  %v2300_v39 = vmul.f32 -1.442695, %v661_v42  ;;  %v4068_v42 = vld [vmem:[#allocation16_spill] sm:$0xff] }
 0x10d   :  { %2651 = vpow2.f32 %v2298_v62  ;;  %v662_v41 = vadd.f32 %v654_v56, %v368_v46 }
 0x10e   :  { %2653 = vpow2.f32 %v2299_v40  ;;  %v98_v40 = vpop.permute.xlu1 %97 }
 0x10f   :  { %2655 = vtanh.f32 %v662_v41  ;;  %v157_v36 = vmul.f32 %v3204_v49, %v98_v40  ;;  %v158_v44 = vmul.f32 %v3211_v52, %v98_v40  ;;  %v4069_v41 = vld [vmem:[#allocation17_spill] sm:$0xff] }
 0x110   :  { %2657 = vpow2.f32 %v2300_v39  ;;  %v4077_v49 = vld [vmem:[#allocation25_spill] sm:$0xff] }
 0x111   :  { %v177_v39 = vadd.f32 %v157_v36, %v4069_v41 }
 0x112   :  { %v199_v63 = vpop.permute.xlu1 %198 }
 0x113   :  { %v253_v46 = vmul.f32 %v4068_v42, %v199_v63  ;;  %v255_v52 = vmul.f32 %v4076_v51, %v199_v63 }
 0x117   :  { %v2652_v0 = vpop.eup %2651 }
 0x118   :  { %v672_v61 = vadd.f32 1.0, %v2652_v0  ;;  %v2654_v47 = vpop.eup %2653  ;;  %v4070_v0 = vld [vmem:[#allocation18_spill] sm:$0xff] }
 0x119   :  { %v673_v38 = vadd.f32 1.0, %v2654_v47  ;;  %v2656_v58 = vpop.eup %2655  ;;  %v295_v47 = vpop.permute.xlu0 %294 }
 0x11a   :  { %2659 = vrcp.f32 %v672_v61  ;;  %v2658_v57 = vpop.eup %2657  ;;  %v254_v61 = vmul.f32 %v4070_v0, %v199_v63  ;;  %v351_v51 = vmul.f32 %v3280_v50, %v295_v47 }
 0x11b   :  { %2661 = vrcp.f32 %v673_v38  ;;  %v674_v1 = vadd.f32 1.0, %v2658_v57  ;;  %v4071_v38 = vld [vmem:[#allocation19_spill] sm:$0xff]  ;;  %v4072_v57 = vld [vmem:[#allocation20_spill] sm:$0xff] }
 0x11d   :  { %2663 = vrcp.f32 %v674_v1 }
 0x124   :  { %v2660_v45 = vpop.eup %2659 }
 0x125   :  { %v683_v43 = vmul.f32 %v2660_v45, %v2656_v58  ;;  %v2662_v60 = vpop.eup %2661  ;;  %v178_v58 = vadd.f32 %v158_v44, %v4071_v38  ;;  %v159_v45 = vmul.f32 %v4072_v57, %v98_v40 }
 0x126   :  { %v682_v55 = vmul.f32 0.0, %v2662_v60  ;;  %v4073_v60 = vld [vmem:[#allocation21_spill] sm:$0xff] }
 0x127   :  { %v2664_v53 = vpop.eup %2663  ;;  %v349_v1 = vmul.f32 %v4073_v60, %v295_v47  ;;  %v179_v36 = vadd.f32 %v159_v45, %v4077_v49 }
 0x128   :  { %v3289_v54 = vadd.f32 %v683_v43, %v682_v55  ;;  %v273_v43 = vadd.f32 %v253_v46, %v177_v39  ;;  %v274_v55 = vadd.f32 %v254_v61, %v178_v58  ;;  %v256_v46 = vmul.f32 %v3271_v37, %v199_v63 }
 0x12a   :  { %2665 = vtanh.f32 %v3289_v54  ;;  %v369_v42 = vadd.f32 %v349_v1, %v273_v43 }
 0x134   :  { %v2666_v56 = vpop.eup %2665 }
 0x135   :  { %v686_v34 = vmul.f32 %v2666_v56, %v2664_v53  ;;  %v4074_v53 = vld [vmem:[#allocation22_spill] sm:$0xff] }
 0x136   :  { %v350_v56 = vmul.f32 %v4074_v53, %v295_v47 }
 0x137   :  { %v687_v62 = vpack.c.bf16 %v686_v34, %v686_v34  ;;  %v4075_v34 = vld [vmem:[#allocation23_spill] sm:$0xff] }
 0x139   :  { %721 = vmatmul.mubr.bf16.vlgmr.msra.gmra.mrb[4].mxu0 %v687_v62  ;;  %762 = vmatmul.mubr.bf16.vlgmr.msra.gmra.mrb[4].mxu1 %v687_v62  ;;  %v160_v62 = vmul.f32 %v4075_v34, %v98_v40  ;;  %v275_v40 = vadd.f32 %v255_v52, %v179_v36 }
 0x13a   :  { %800 = vmatpush1.bf16.msra.mxu0 %v2952_v4  ;;  %841 = vmatpush1.bf16.msra.mxu1 %v2957_v5 }
 0x13b   :  { %801 = vmatprep.subr.bf16.mxu0 %v2963_v6  ;;  %842 = vmatprep.subr.bf16.mxu1 %v2970_v7  ;;  %v180_v61 = vadd.f32 %v160_v62, %v3274_v59 }
 0x13c   :  { %831 = vmatprep.mubr.bf16.mxu0 %v4067_v28  ;;  %872 = vmatprep.mubr.bf16.mxu1 %v4067_v28 }
 0x13d   :  { %v276_v49 = vadd.f32 %v256_v46, %v180_v61 }
 0x13e   :  { %802 = vmatpush1.bf16.msra.mxu0 %v2975_v8  ;;  %843 = vmatpush1.bf16.msra.mxu1 %v2981_v9 }
 0x13f   :  { %803 = vmatprep.subr.bf16.mxu0 %v2987_v10  ;;  %844 = vmatprep.subr.bf16.mxu1 %v2992_v11 }
 0x142   :  { %804 = vmatpush1.bf16.msra.mxu0 %v2997_v12  ;;  %845 = vmatpush1.bf16.msra.mxu1 %v3002_v13 }
 0x143   :  { %805 = vmatprep.subr.bf16.mxu0 %v3009_v14  ;;  %846 = vmatprep.subr.bf16.mxu1 %v3016_v15 }
 0x146   :  { %806 = vmatpush1.bf16.msra.mxu0 %v3021_v16  ;;  %847 = vmatpush1.bf16.msra.mxu1 %v3028_v17 }
 0x147   :  { %807 = vmatprep.subr.bf16.mxu0 %v3033_v18  ;;  %848 = vmatprep.subr.bf16.mxu1 %v3040_v19 }
 0x14a   :  { %808 = vmatpush1.bf16.msra.mxu0 %v3045_v20  ;;  %849 = vmatpush1.bf16.msra.mxu1 %v3050_v21 }
 0x14b   :  { %809 = vmatprep.subr.bf16.mxu0 %v3057_v22  ;;  %850 = vmatprep.subr.bf16.mxu1 %v3064_v23 }
 0x14e   :  { %810 = vmatpush1.bf16.msra.mxu0 %v3071_v24  ;;  %851 = vmatpush1.bf16.msra.mxu1 %v3076_v25 }
 0x14f   :  { %811 = vmatprep.subr.bf16.mxu0 %v3083_v26  ;;  %852 = vmatprep.subr.bf16.mxu1 %v3088_v27 }
 0x152   :  { %812 = vmatpush1.bf16.msra.mxu0 %v3096_v29  ;;  %853 = vmatpush1.bf16.msra.mxu1 %v3101_v30 }
 0x153   :  { %813 = vmatprep.subr.bf16.mxu0 %v3106_v31  ;;  %854 = vmatprep.subr.bf16.mxu1 %v3111_v32 }
 0x156   :  { %814 = vmatpush1.bf16.msra.mxu0 %v3120_v33  ;;  %855 = vmatpush1.bf16.msra.mxu1 %v3126_v35 }
 0x157   :  { %910 = vmatprep.subr.bf16.mxu0 %v2941_v2  ;;  %951 = vmatprep.subr.bf16.mxu1 %v2946_v3  ;;  %v370_v3 = vadd.f32 %v350_v56, %v274_v55 }
 0x20c   :  { %v722_v41 = vpop.f32.mrb[4].mxu0  ;;  %v763_v0 = vpop.f32.mrb[4].mxu1 }
 0x20d   :  { %v770_v2 = vadd.f32 %v722_v41, %v369_v42  ;;  %v724_v44 = vpop.f32.mrb[5].mxu0  ;;  %v765_v38 = vpop.f32.mrb[5].mxu1  ;;  %v352_v42 = vmul.f32 %v3285_v48, %v295_v47  ;;  %v371_v41 = vadd.f32 %v351_v51, %v275_v40  ;;  %v4079_v40 = vld [vmem:[#allocation6_spill] sm:$0xff] }
 0x20e   :  { %v771_v39 = vadd.f32 %v724_v44, %v370_v3  ;;  %v726_v58 = vpop.f32.mrb[6].mxu0  ;;  %v767_v53 = vpop.f32.mrb[6].mxu1 }
 0x20f   :  { %v2301_v60 = vmul.f32 -1.442695, %v770_v2  ;;  %v727_v43 = vpop.f32.mrb[7].mxu0  ;;  %v768_v1 = vpop.f32.mrb[7].mxu1  ;;  %v772_v55 = vadd.f32 %v763_v0, %v371_v41  ;;  %v372_v63 = vadd.f32 %v352_v42, %v276_v49  ;;  %v4081_v41 = vld [vmem:[#allocation12_spill] sm:$0xff] }
 0x210   :  { %v2302_v45 = vmul.f32 -1.442695, %v771_v39  ;;  %v64_v43 = vld [vmem:[%s3972_s0 + $0x18] sm:$0xff]  ;;  %v65_v1 = vld [vmem:[%s3972_s0 + $0x20] sm:$0xff]  ;;  %v103_v42 = vpop.permute.xlu1 %102 }
 0x211   :  { %2667 = vpow2.f32 %v2301_v60  ;;  %v773_v3 = vadd.f32 %v765_v38, %v372_v63  ;;  %v2303_v56 = vmul.f32 -1.442695, %v772_v55  ;;  %107 = vperm.xlu1 %2548, %v64_v43   ;;  %206 = vperm.xlu0 %2549, %v64_v43   ;;  %v161_v55 = vmul.f32 %v4081_v41, %v103_v42  ;;  %v4082_v63 = vld [vmem:[#allocation14_spill] sm:$0xff] }
 0x212   :  { %2669 = vpow2.f32 %v2302_v45  ;;  %v4080_v45 = vmov 2  }
 0x213   :  { %2671 = vtanh.f32 %v773_v3  ;;  %v162_v3 = vmul.f32 %v4082_v63, %v103_v42 }
 0x214   :  { %2673 = vpow2.f32 %v2303_v56  ;;  %v203_v56 = vpop.permute.xlu1 %202 }
 0x215   :  { %2550 = vset.pattern.permute.xlu1 %v4080_v45  ;;  %210 = vperm.xlu0 %2549, %v65_v1  }
 0x216   :  { %302 = vperm.xlu1 %2550, %v64_v43   ;;  %v4089_v43 = vld [vmem:[#allocation24_spill] sm:$0xff] }
 0x21a   :  { %2551 = vset.pattern.permute.xlu1 %v4067_v28 }
 0x21b   :  { %v2668_v62 = vpop.eup %2667  ;;  %112 = vperm.xlu1 %2551, %v65_v1  }
 0x21c   :  { %v783_v44 = vadd.f32 1.0, %v2668_v62  ;;  %v2670_v2 = vpop.eup %2669  ;;  %v4083_v62 = vld [vmem:[#allocation16_spill] sm:$0xff] }
 0x21d   :  { %v784_v52 = vadd.f32 1.0, %v2670_v2  ;;  %v2672_v53 = vpop.eup %2671  ;;  %v4084_v2 = vld [vmem:[#allocation17_spill] sm:$0xff] }
 0x21e   :  { %2675 = vrcp.f32 %v783_v44  ;;  %v2674_v36 = vpop.eup %2673  ;;  %v257_v44 = vmul.f32 %v4083_v62, %v203_v56  ;;  %v4090_v62 = vld [vmem:[#allocation25_spill] sm:$0xff] }
 0x21f   :  { %2677 = vrcp.f32 %v784_v52  ;;  %v785_v47 = vadd.f32 1.0, %v2674_v36  ;;  %2552 = vset.pattern.permute.xlu1 %v4080_v45  ;;  %v181_v52 = vadd.f32 %v161_v55, %v4084_v2 }
 0x220   :  { %306 = vperm.xlu1 %2552, %v65_v1   ;;  %v259_v1 = vmul.f32 %v4089_v43, %v203_v56 }
 0x221   :  { %2679 = vrcp.f32 %v785_v47  ;;  %v163_v47 = vmul.f32 %v4072_v57, %v103_v42 }
 0x223   :  { %v183_v55 = vadd.f32 %v163_v47, %v4090_v62 }
 0x224   :  { %2553 = vset.pattern.permute.xlu1 %v4067_v28 }
 0x228   :  { %v2676_v60 = vpop.eup %2675 }
 0x229   :  { %v794_v46 = vmul.f32 %v2676_v60, %v2672_v53  ;;  %v2678_v39 = vpop.eup %2677  ;;  %v4085_v53 = vld [vmem:[#allocation18_spill] sm:$0xff]  ;;  %v299_v60 = vpop.permute.xlu0 %298 }
 0x22a   :  { %v793_v51 = vmul.f32 %v2678_v39, %v3289_v54  ;;  %v4078_v54 = vld [vmem:[#allocation5_spill] sm:$0xff]  ;;  %v258_v36 = vmul.f32 %v4085_v53, %v203_v56  ;;  %v355_v43 = vmul.f32 %v3280_v50, %v299_v60 }
 0x22b   :  { %v2680_v49 = vpop.eup %2679 }
 0x22c   :  { %v3343_v0 = vadd.f32 %v794_v46, %v793_v51  ;;  %v4086_v46 = vld [vmem:[#allocation19_spill] sm:$0xff]  ;;  %v277_v51 = vadd.f32 %v257_v44, %v181_v52  ;;  %v260_v44 = vmul.f32 %v3271_v37, %v203_v56 }
 0x22d   :  { %v182_v39 = vadd.f32 %v162_v3, %v4086_v46 }
 0x22e   :  { %2681 = vtanh.f32 %v3343_v0 }
 0x238   :  { %v2682_v38 = vpop.eup %2681 }
 0x239   :  { %v797_v61 = vmul.f32 %v2682_v38, %v2680_v49  ;;  %v4087_v49 = vld [vmem:[#allocation21_spill] sm:$0xff] }
 0x23a   :  { %v353_v38 = vmul.f32 %v4087_v49, %v299_v60 }
 0x23b   :  { %v798_v58 = vpack.c.bf16 %v797_v61, %v797_v61  ;;  %v278_v61 = vadd.f32 %v258_v36, %v182_v39 }
 0x23c   :  { %v373_v45 = vadd.f32 %v353_v38, %v277_v51 }
 0x23d   :  { %832 = vmatmul.mubr.bf16.vlgmr.msra.gmra.mrb[8].mxu0 %v798_v58  ;;  %873 = vmatmul.mubr.bf16.vlgmr.msra.gmra.mrb[8].mxu1 %v798_v58  ;;  %v4088_v58 = vld [vmem:[#allocation22_spill] sm:$0xff] }
 0x23e   :  { %911 = vmatpush1.bf16.msra.mxu0 %v2952_v4  ;;  %952 = vmatpush1.bf16.msra.mxu1 %v2957_v5 }
 0x23f   :  { %912 = vmatprep.subr.bf16.mxu0 %v2963_v6  ;;  %953 = vmatprep.subr.bf16.mxu1 %v2970_v7 }
 0x240   :  { %942 = vmatprep.mubr.bf16.mxu0 %v4067_v28  ;;  %983 = vmatprep.mubr.bf16.mxu1 %v4067_v28 }
 0x242   :  { %913 = vmatpush1.bf16.msra.mxu0 %v2975_v8  ;;  %954 = vmatpush1.bf16.msra.mxu1 %v2981_v9 }
 0x243   :  { %914 = vmatprep.subr.bf16.mxu0 %v2987_v10  ;;  %955 = vmatprep.subr.bf16.mxu1 %v2992_v11 }
 0x246   :  { %915 = vmatpush1.bf16.msra.mxu0 %v2997_v12  ;;  %956 = vmatpush1.bf16.msra.mxu1 %v3002_v13 }
 0x247   :  { %916 = vmatprep.subr.bf16.mxu0 %v3009_v14  ;;  %957 = vmatprep.subr.bf16.mxu1 %v3016_v15 }
 0x24a   :  { %917 = vmatpush1.bf16.msra.mxu0 %v3021_v16  ;;  %958 = vmatpush1.bf16.msra.mxu1 %v3028_v17 }
 0x24b   :  { %918 = vmatprep.subr.bf16.mxu0 %v3033_v18  ;;  %959 = vmatprep.subr.bf16.mxu1 %v3040_v19 }
 0x24e   :  { %919 = vmatpush1.bf16.msra.mxu0 %v3045_v20  ;;  %960 = vmatpush1.bf16.msra.mxu1 %v3050_v21 }
 0x24f   :  { %920 = vmatprep.subr.bf16.mxu0 %v3057_v22  ;;  %961 = vmatprep.subr.bf16.mxu1 %v3064_v23 }
 0x252   :  { %921 = vmatpush1.bf16.msra.mxu0 %v3071_v24  ;;  %962 = vmatpush1.bf16.msra.mxu1 %v3076_v25 }
 0x253   :  { %922 = vmatprep.subr.bf16.mxu0 %v3083_v26  ;;  %963 = vmatprep.subr.bf16.mxu1 %v3088_v27 }
 0x256   :  { %923 = vmatpush1.bf16.msra.mxu0 %v3096_v29  ;;  %964 = vmatpush1.bf16.msra.mxu1 %v3101_v30 }
 0x257   :  { %924 = vmatprep.subr.bf16.mxu0 %v3106_v31  ;;  %965 = vmatprep.subr.bf16.mxu1 %v3111_v32 }
 0x25a   :  { %925 = vmatpush1.bf16.msra.mxu0 %v3120_v33  ;;  %966 = vmatpush1.bf16.msra.mxu1 %v3126_v35 }
 0x25b   :  { %1021 = vmatprep.subr.bf16.mxu0 %v4078_v54  ;;  %1062 = vmatprep.subr.bf16.mxu1 %v4079_v40  ;;  %v354_v54 = vmul.f32 %v4088_v58, %v299_v60  ;;  %v164_v40 = vmul.f32 %v4075_v34, %v103_v42  ;;  %v279_v42 = vadd.f32 %v259_v1, %v183_v55 }
 0x25d   :  { %v374_v63 = vadd.f32 %v354_v54, %v278_v61  ;;  %v184_v36 = vadd.f32 %v164_v40, %v3274_v59  ;;  %v375_v61 = vadd.f32 %v355_v43, %v279_v42 }
 0x25f   :  { %v280_v62 = vadd.f32 %v260_v44, %v184_v36 }
 0x310   :  { %v833_v2 = vpop.f32.mrb[8].mxu0  ;;  %v874_v53 = vpop.f32.mrb[8].mxu1 }
 0x311   :  { %v881_v41 = vadd.f32 %v833_v2, %v373_v45  ;;  %v835_v3 = vpop.f32.mrb[9].mxu0  ;;  %v876_v46 = vpop.f32.mrb[9].mxu1  ;;  %v356_v2 = vmul.f32 %v3285_v48, %v299_v60  ;;  %v883_v54 = vadd.f32 %v874_v53, %v375_v61 }
 0x312   :  { %v882_v52 = vadd.f32 %v835_v3, %v374_v63  ;;  %v837_v39 = vpop.f32.mrb[10].mxu0  ;;  %v878_v58 = vpop.f32.mrb[10].mxu1 }
 0x313   :  { %v2304_v49 = vmul.f32 -1.442695, %v881_v41  ;;  %v838_v51 = vpop.f32.mrb[11].mxu0  ;;  %v879_v38 = vpop.f32.mrb[11].mxu1  ;;  %v376_v56 = vadd.f32 %v356_v2, %v280_v62  ;;  %v2306_v45 = vmul.f32 -1.442695, %v883_v54 }
 0x314   :  { %v2305_v47 = vmul.f32 -1.442695, %v882_v52 }
 0x315   :  { %2683 = vpow2.f32 %v2304_v49  ;;  %v884_v63 = vadd.f32 %v876_v46, %v376_v56 }
 0x316   :  { %2685 = vpow2.f32 %v2305_v47 }
 0x317   :  { %2687 = vtanh.f32 %v884_v63 }
 0x318   :  { %2689 = vpow2.f32 %v2306_v45 }
 0x31f   :  { %v2684_v40 = vpop.eup %2683 }
 0x320   :  { %v894_v3 = vadd.f32 1.0, %v2684_v40  ;;  %v2686_v41 = vpop.eup %2685 }
 0x321   :  { %v895_v58 = vadd.f32 1.0, %v2686_v41  ;;  %v2688_v1 = vpop.eup %2687 }
 0x322   :  { %2691 = vrcp.f32 %v894_v3  ;;  %v2690_v55 = vpop.eup %2689 }
 0x323   :  { %2693 = vrcp.f32 %v895_v58  ;;  %v896_v60 = vadd.f32 1.0, %v2690_v55 }
 0x325   :  { %2695 = vrcp.f32 %v896_v60 }
 0x32c   :  { %v2692_v49 = vpop.eup %2691 }
 0x32d   :  { %v905_v44 = vmul.f32 %v2692_v49, %v2688_v1  ;;  %v2694_v52 = vpop.eup %2693 }
 0x32e   :  { %v904_v43 = vmul.f32 %v2694_v52, %v3343_v0 }
 0x32f   :  { %v2696_v62 = vpop.eup %2695 }
 0x330   :  { %v3407_v53 = vadd.f32 %v905_v44, %v904_v43 }
 0x332   :  { %2697 = vtanh.f32 %v3407_v53 }
 0x33c   :  { %v2698_v46 = vpop.eup %2697 }
 0x33d   :  { %v908_v36 = vmul.f32 %v2698_v46, %v2696_v62 }
 0x33f   :  { %v909_v39 = vpack.c.bf16 %v908_v36, %v908_v36 }
 0x341   :  { %943 = vmatmul.mubr.bf16.vlgmr.msra.gmra.mrb[12].mxu0 %v909_v39  ;;  %984 = vmatmul.mubr.bf16.vlgmr.msra.gmra.mrb[12].mxu1 %v909_v39 }
 0x342   :  { %1022 = vmatpush1.bf16.msra.mxu0 %v2952_v4  ;;  %1063 = vmatpush1.bf16.msra.mxu1 %v2957_v5  ;;  %v108_v4 = vpop.permute.xlu1 %107  ;;  %v4091_v5 = vld [vmem:[#allocation12_spill] sm:$0xff] }
 0x343   :  { %1023 = vmatprep.subr.bf16.mxu0 %v2963_v6  ;;  %1064 = vmatprep.subr.bf16.mxu1 %v2970_v7  ;;  %v165_v6 = vmul.f32 %v4091_v5, %v108_v4  ;;  %v4092_v7 = vld [vmem:[#allocation14_spill] sm:$0xff] }
 0x344   :  { %1053 = vmatprep.mubr.bf16.mxu0 %v4067_v28  ;;  %1094 = vmatprep.mubr.bf16.mxu1 %v4067_v28 }
 0x346   :  { %1024 = vmatpush1.bf16.msra.mxu0 %v2975_v8  ;;  %1065 = vmatpush1.bf16.msra.mxu1 %v2981_v9  ;;  %v166_v8 = vmul.f32 %v4092_v7, %v108_v4  ;;  %v207_v9 = vpop.permute.xlu0 %206 }
 0x347   :  { %1025 = vmatprep.subr.bf16.mxu0 %v2987_v10  ;;  %1066 = vmatprep.subr.bf16.mxu1 %v2992_v11  ;;  %v4093_v10 = vld [vmem:[#allocation16_spill] sm:$0xff] }
 0x348   :  { %v261_v11 = vmul.f32 %v4093_v10, %v207_v9 }
 0x34a   :  { %1026 = vmatpush1.bf16.msra.mxu0 %v2997_v12  ;;  %1067 = vmatpush1.bf16.msra.mxu1 %v3002_v13  ;;  %v4094_v12 = vld [vmem:[#allocation17_spill] sm:$0xff] }
 0x34b   :  { %1027 = vmatprep.subr.bf16.mxu0 %v3009_v14  ;;  %1068 = vmatprep.subr.bf16.mxu1 %v3016_v15  ;;  %v185_v13 = vadd.f32 %v165_v6, %v4094_v12  ;;  %v4095_v14 = vld [vmem:[#allocation18_spill] sm:$0xff] }
 0x34c   :  { %v262_v15 = vmul.f32 %v4095_v14, %v207_v9 }
 0x34e   :  { %1028 = vmatpush1.bf16.msra.mxu0 %v3021_v16  ;;  %1069 = vmatpush1.bf16.msra.mxu1 %v3028_v17  ;;  %v4096_v16 = vld [vmem:[#allocation19_spill] sm:$0xff] }
 0x34f   :  { %1029 = vmatprep.subr.bf16.mxu0 %v3033_v18  ;;  %1070 = vmatprep.subr.bf16.mxu1 %v3040_v19  ;;  %v186_v17 = vadd.f32 %v166_v8, %v4096_v16  ;;  %v303_v18 = vpop.permute.xlu1 %302  ;;  %v167_v19 = vmul.f32 %v4072_v57, %v108_v4 }
 0x350   :  { %v359_v2 = vmul.f32 %v3280_v50, %v303_v18  ;;  %v360_v55 = vmul.f32 %v3285_v48, %v303_v18 }
 0x352   :  { %1030 = vmatpush1.bf16.msra.mxu0 %v3045_v20  ;;  %1071 = vmatpush1.bf16.msra.mxu1 %v3050_v21  ;;  %v281_v20 = vadd.f32 %v261_v11, %v185_v13  ;;  %v4097_v21 = vld [vmem:[#allocation21_spill] sm:$0xff] }
 0x353   :  { %1031 = vmatprep.subr.bf16.mxu0 %v3057_v22  ;;  %1072 = vmatprep.subr.bf16.mxu1 %v3064_v23  ;;  %v357_v22 = vmul.f32 %v4097_v21, %v303_v18  ;;  %v282_v23 = vadd.f32 %v262_v15, %v186_v17 }
 0x356   :  { %1032 = vmatpush1.bf16.msra.mxu0 %v3071_v24  ;;  %1073 = vmatpush1.bf16.msra.mxu1 %v3076_v25  ;;  %v4098_v24 = vld [vmem:[#allocation22_spill] sm:$0xff] }
 0x357   :  { %1033 = vmatprep.subr.bf16.mxu0 %v3083_v26  ;;  %1074 = vmatprep.subr.bf16.mxu1 %v3088_v27  ;;  %v358_v25 = vmul.f32 %v4098_v24, %v303_v18  ;;  %v168_v26 = vmul.f32 %v4075_v34, %v108_v4  ;;  %v4099_v27 = vld [vmem:[#allocation24_spill] sm:$0xff] }
 0x359   :  { %v188_v51 = vadd.f32 %v168_v26, %v3274_v59  ;;  %v4031_v26 = vmov 0.0|0.0  }
 0x35a   :  { %1034 = vmatpush1.bf16.msra.mxu0 %v3096_v29  ;;  %1075 = vmatpush1.bf16.msra.mxu1 %v3101_v30  ;;  %v263_v29 = vmul.f32 %v4099_v27, %v207_v9  ;;  %v377_v30 = vadd.f32 %v357_v22, %v281_v20 }
 0x35b   :  { %1035 = vmatprep.subr.bf16.mxu0 %v3106_v31  ;;  %1076 = vmatprep.subr.bf16.mxu1 %v3111_v32  ;;  %v4100_v31 = vld [vmem:[#allocation25_spill] sm:$0xff] }
 0x35c   :  { %v187_v32 = vadd.f32 %v167_v19, %v4100_v31 }
 0x35e   :  { %1036 = vmatpush1.bf16.msra.mxu0 %v3120_v33  ;;  %1077 = vmatpush1.bf16.msra.mxu1 %v3126_v35  ;;  %v378_v33 = vadd.f32 %v358_v25, %v282_v23  ;;  %v264_v35 = vmul.f32 %v3271_v37, %v207_v9  ;;  %v283_v47 = vadd.f32 %v263_v29, %v187_v32  ;;  %v1131_v23 = vld [vmem:[%s3978_s6] sm:$0xff]  ;;  %v1133_v29 = vld [vmem:[%s3978_s6 + $0x10] sm:$0xff] }
 0x35f   :  { %2482 = vmatprep.subr.bf16.mxu0 %v4031_v26 }
 0x360   :  { %v284_v1 = vadd.f32 %v264_v35, %v188_v51  ;;  %v379_v49 = vadd.f32 %v359_v2, %v283_v47  ;;  %v1136_v35 = vld [vmem:[%s3978_s6 + $0x28] sm:$0xff]  ;;  %v1138_v51 = vld [vmem:[%s3978_s6 + $0x38] sm:$0xff]  ;;  %v1139_v47 = vld [vmem:[%s3978_s6 + $0x40] sm:$0xff] }
 0x361   :  { %v1140_v2 = vld [vmem:[%s3978_s6 + $0x48] sm:$0xff] }
 0x362   :  { %v380_v44 = vadd.f32 %v360_v55, %v284_v1  ;;  %v1146_v1 = vld [vmem:[%s3978_s6 + $0x78] sm:$0xff] }
 0x414   :  { %v944_v0 = vpop.f32.mrb[12].mxu0  ;;  %v985_v42 = vpop.f32.mrb[12].mxu1 }
 0x415   :  { %v992_v38 = vadd.f32 %v944_v0, %v377_v30  ;;  %v946_v61 = vpop.f32.mrb[13].mxu0  ;;  %v987_v54 = vpop.f32.mrb[13].mxu1  ;;  %v994_v52 = vadd.f32 %v985_v42, %v379_v49  ;;  %v1134_v30 = vld [vmem:[%s3978_s6 + $0x18] sm:$0xff]  ;;  %v1137_v42 = vld [vmem:[%s3978_s6 + $0x30] sm:$0xff] }
 0x416   :  { %v993_v56 = vadd.f32 %v946_v61, %v378_v33  ;;  %v948_v63 = vpop.f32.mrb[14].mxu0  ;;  %v989_v45 = vpop.f32.mrb[14].mxu1  ;;  %v995_v60 = vadd.f32 %v987_v54, %v380_v44  ;;  %v2486_v32 = vpack.c.bf16 %v1134_v30, %v1133_v29  ;;  %v1135_v33 = vld [vmem:[%s3978_s6 + $0x20] sm:$0xff]  ;;  %v2495_v61 = vpack.c.bf16 %v1140_v2, %v1139_v47  ;;  %v1141_v54 = vld [vmem:[%s3978_s6 + $0x50] sm:$0xff] }
 0x417   :  { %v2307_v40 = vmul.f32 -1.442695, %v992_v38  ;;  %v949_v3 = vpop.f32.mrb[15].mxu0  ;;  %v990_v41 = vpop.f32.mrb[15].mxu1  ;;  %v2309_v43 = vmul.f32 -1.442695, %v994_v52  ;;  %v2489_v0 = vpack.c.bf16 %v1136_v35, %v1135_v33  ;;  %v2492_v38 = vpack.c.bf16 %v1138_v51, %v1137_v42 }
 0x418   :  { %v2308_v58 = vmul.f32 -1.442695, %v993_v56  ;;  %v1142_v56 = vld [vmem:[%s3978_s6 + $0x58] sm:$0xff]  ;;  %v1143_v45 = vld [vmem:[%s3978_s6 + $0x60] sm:$0xff]  ;;  %v4029_v3 = vmov 0.0   ;;  %v113_v49 = vpop.permute.xlu1 %112 }
 0x419   :  { %2699 = vpow2.f32 %v2307_v40  ;;  %v2498_v63 = vpack.c.bf16 %v1142_v56, %v1141_v54  ;;  %v1144_v40 = vld [vmem:[%s3978_s6 + $0x68] sm:$0xff]  ;;  %v169_v44 = vmul.f32 %v4091_v5, %v113_v49  ;;  %v170_v52 = vmul.f32 %v4092_v7, %v113_v49 }
 0x41a   :  { %2701 = vpow2.f32 %v2308_v58  ;;  %v2501_v41 = vpack.c.bf16 %v1144_v40, %v1143_v45  ;;  %v1145_v58 = vld [vmem:[%s3978_s6 + $0x70] sm:$0xff]  ;;  %v172_v7 = vmul.f32 %v4075_v34, %v113_v49 }
 0x41b   :  { %2703 = vtanh.f32 %v995_v60  ;;  %v2504_v55 = vpack.c.bf16 %v1146_v1, %v1145_v58  ;;  %v211_v60 = vpop.permute.xlu0 %210  ;;  %v3539_v58 = vld [vmem:[#allocation2 + $0x4] ss:$16 sps:$4 sm:$0xff]   ;;  %v3541_v1 = vld [vmem:[#allocation2] ss:$16 sps:$4 sm:$0xff]  }
 0x41c   :  { %2705 = vpow2.f32 %v2309_v43  ;;  %v265_v43 = vmul.f32 %v4093_v10, %v211_v60  ;;  %4101 = vst [vmem:[#allocation20_spill] sm:$0xff] %v3539_v58  ;;  %1549 = vmatprep.subr.bf16.mxu1 %v3539_v58 }
 0x423   :  { %v2700_v62 = vpop.eup %2699 }
 0x424   :  { %v1005_v46 = vadd.f32 1.0, %v2700_v62  ;;  %v2702_v36 = vpop.eup %2701  ;;  %v189_v62 = vadd.f32 %v169_v44, %v4094_v12  ;;  %v3547_v44 = vld [vmem:[#allocation2 + $0x8] ss:$16 sps:$4 sm:$0xff]  }
 0x425   :  { %v1006_v39 = vadd.f32 1.0, %v2702_v36  ;;  %v2704_v4 = vpop.eup %2703  ;;  %v307_v36 = vpop.permute.xlu1 %306 }
 0x426   :  { %2707 = vrcp.f32 %v1005_v46  ;;  %v2706_v6 = vpop.eup %2705  ;;  %v266_v46 = vmul.f32 %v4095_v14, %v211_v60  ;;  %v362_v5 = vmul.f32 %v4098_v24, %v307_v36  ;;  %v364_v30 = vmul.f32 %v3285_v48, %v307_v36 }
 0x427   :  { %2709 = vrcp.f32 %v1006_v39  ;;  %v1007_v13 = vadd.f32 1.0, %v2706_v6  ;;  %v190_v39 = vadd.f32 %v170_v52, %v4096_v16  ;;  %v285_v6 = vadd.f32 %v265_v43, %v189_v62  ;;  %v3555_v52 = vld [vmem:[#allocation2 + $0x20] ss:$16 sps:$4 sm:$0xff]   ;;  %v3561_v43 = vld [vmem:[#allocation2 + $0x44] ss:$16 sps:$4 sm:$0xff]  }
 0x428   :  { %v3563_v62 = vld [vmem:[#allocation2 + $0x4c] ss:$16 sps:$4 sm:$0xff]  }
 0x429   :  { %2711 = vrcp.f32 %v1007_v13 }
 0x430   :  { %v2708_v8 = vpop.eup %2707 }
 0x431   :  { %v1016_v9 = vmul.f32 %v2708_v8, %v2704_v4  ;;  %v2710_v11 = vpop.eup %2709  ;;  %v171_v4 = vmul.f32 %v4072_v57, %v113_v49  ;;  %v361_v8 = vmul.f32 %v4097_v21, %v307_v36  ;;  %v268_v57 = vmul.f32 %v3271_v37, %v211_v60  ;;  %v3545_v49 = vld [vmem:[#allocation2 + $0x24] ss:$16 sps:$4 sm:$0xff]  }
 0x432   :  { %v1015_v15 = vmul.f32 %v2710_v11, %v3407_v53  ;;  %v1132_v53 = vld [vmem:[%s3978_s6 + $0x8] sm:$0xff]  ;;  %v267_v11 = vmul.f32 %v4099_v27, %v211_v60  ;;  %v192_v21 = vadd.f32 %v172_v7, %v3274_v59  ;;  %v363_v27 = vmul.f32 %v3280_v50, %v307_v36  ;;  %v3591_v7 = vld [vmem:[#allocation2 + $0x80] ss:$16 sps:$4 sm:$0xff]  }
 0x433   :  { %v2712_v18 = vpop.eup %2711  ;;  %v2483_v25 = vpack.c.bf16 %v1132_v53, %v1131_v23  ;;  %v381_v10 = vadd.f32 %v361_v8, %v285_v6  ;;  %v191_v12 = vadd.f32 %v171_v4, %v4100_v31  ;;  %v3557_v60 = vld [vmem:[#allocation2 + $0x28] ss:$16 sps:$4 sm:$0xff]   ;;  %v3575_v4 = vld [vmem:[#allocation2 + $0x6c] ss:$16 sps:$4 sm:$0xff]   ;;  %v3579_v6 = vld [vmem:[#allocation2 + $0x60] ss:$16 sps:$4 sm:$0xff]  }
 0x434   :  { %v3459_v17 = vadd.f32 %v1016_v9, %v1015_v15  ;;  %v286_v9 = vadd.f32 %v266_v46, %v190_v39  ;;  %v288_v29 = vadd.f32 %v268_v57, %v192_v21  ;;  %v3567_v46 = vld [vmem:[#allocation2 + $0x40] ss:$16 sps:$4 sm:$0xff]   ;;  %v3569_v36 = vld [vmem:[#allocation2 + $0x48] ss:$16 sps:$4 sm:$0xff]   ;;  %v3573_v39 = vld [vmem:[#allocation2 + $0x64] ss:$16 sps:$4 sm:$0xff]  }
 0x435   :  { %v287_v34 = vadd.f32 %v267_v11, %v191_v12  ;;  %v3581_v8 = vld [vmem:[#allocation2 + $0x68] ss:$16 sps:$4 sm:$0xff]   ;;  %v3599_v12 = vld [vmem:[#allocation2 + $0xac] ss:$16 sps:$4 sm:$0xff]   ;;  %v3621_v57 = vld [vmem:[#allocation2 + $0xe4] ss:$16 sps:$4 sm:$0xff]  }
 0x436   :  { %2713 = vtanh.f32 %v3459_v17  ;;  %v382_v15 = vadd.f32 %v362_v5, %v286_v9  ;;  %v384_v37 = vadd.f32 %v364_v30, %v288_v29  ;;  %v3585_v9 = vld [vmem:[#allocation2 + $0x84] ss:$16 sps:$4 sm:$0xff]   ;;  %v3587_v5 = vld [vmem:[#allocation2 + $0x8c] ss:$16 sps:$4 sm:$0xff]   ;;  %v3593_v11 = vld [vmem:[#allocation2 + $0x88] ss:$16 sps:$4 sm:$0xff]  }
 0x437   :  { %4103 = vst [vmem:[#allocation5_spill] sm:$0xff] %v3621_v57  ;;  %v3627_v21 = vld [vmem:[#allocation2 + $0xe0] ss:$16 sps:$4 sm:$0xff]  }
 0x438   :  { %4105 = vst [vmem:[#allocation12_spill] sm:$0xff] %v3627_v21  ;;  %v1224_v29 = vld [vmem:[%s3974_s2] sm:$0xff] }
 0x440   :  { %v2714_v19 = vpop.eup %2713 }
 0x441   :  { %v1019_v20 = vmul.f32 %v2714_v19, %v2712_v18 }
 0x443   :  { %v1020_v22 = vpack.c.bf16 %v1019_v20, %v1019_v20 }
 0x445   :  { %1054 = vmatmul.mubr.bf16.vlgmr.msra.gmra.mrb[16].mxu0 %v1020_v22  ;;  %1095 = vmatmul.mubr.bf16.vlgmr.msra.gmra.mrb[16].mxu1 %v1020_v22 }
 0x446   :  { %1581 = vmatprep.mubr.bf16.mxu1 %v4067_v28  ;;  %2484 = vmatpush3.bf16.msra.mxu0 %v2483_v25 }
 0x447   :  { %2485 = vmatprep.subr.bf16.mxu0 %v4031_v26  ;;  %2432 = vmatprep.mubr.msk.f32.mxu0 %vm2844_vm0, %v4029_v3 }
 0x448   :  { %1550 = vmatpush1.bf16.msra.mxu1 %v3541_v1 }
 0x449   :  { %1551 = vmatprep.subr.bf16.mxu1 %v3545_v49 }
 0x44a   :  { %2487 = vmatpush3.bf16.msra.mxu0 %v2486_v32  ;;  %v383_v32 = vadd.f32 %v363_v27, %v287_v34 }
 0x44b   :  { %2488 = vmatprep.subr.bf16.mxu0 %v4031_v26 }
 0x44c   :  { %1552 = vmatpush1.bf16.msra.mxu1 %v3555_v52 }
 0x44d   :  { %1553 = vmatprep.subr.bf16.mxu1 %v3561_v43 }
 0x44e   :  { %2490 = vmatpush3.bf16.msra.mxu0 %v2489_v0 }
 0x44f   :  { %2491 = vmatprep.subr.bf16.mxu0 %v4031_v26 }
 0x450   :  { %1554 = vmatpush1.bf16.msra.mxu1 %v3567_v46 }
 0x451   :  { %1555 = vmatprep.subr.bf16.mxu1 %v3573_v39 }
 0x452   :  { %2493 = vmatpush3.bf16.msra.mxu0 %v2492_v38 }
 0x453   :  { %2494 = vmatprep.subr.bf16.mxu0 %v4031_v26 }
 0x454   :  { %1556 = vmatpush1.bf16.msra.mxu1 %v3579_v6 }
 0x455   :  { %1557 = vmatprep.subr.bf16.mxu1 %v3585_v9 }
 0x456   :  { %2496 = vmatpush3.bf16.msra.mxu0 %v2495_v61 }
 0x457   :  { %2497 = vmatprep.subr.bf16.mxu0 %v4031_v26 }
 0x458   :  { %1558 = vmatpush1.bf16.msra.mxu1 %v3591_v7 }
 0x45a   :  { %2499 = vmatpush3.bf16.msra.mxu0 %v2498_v63 }
 0x45b   :  { %2500 = vmatprep.subr.bf16.mxu0 %v4031_v26 }
 0x45e   :  { %2502 = vmatpush3.bf16.msra.mxu0 %v2501_v41 }
 0x45f   :  { %2503 = vmatprep.subr.bf16.mxu0 %v4031_v26 }
 0x462   :  { %2505 = vmatpush3.bf16.msra.mxu0 %v2504_v55  ;;  %v3543_v55 = vld [vmem:[#allocation2 + $0xc] ss:$16 sps:$4 sm:$0xff]  }
 0x463   :  { %4102 = vst [vmem:[#allocation23_spill] sm:$0xff] %v3543_v55  ;;  %1590 = vmatprep.subr.bf16.mxu0 %v3543_v55 }
 0x518   :  { %v1055_v13 = vpop.f32.mrb[16].mxu0  ;;  %v1096_v14 = vpop.f32.mrb[16].mxu1 }
 0x519   :  { %v1103_v18 = vadd.f32 %v1055_v13, %v381_v10  ;;  %v1057_v16 = vpop.f32.mrb[17].mxu0  ;;  %v1098_v19 = vpop.f32.mrb[17].mxu1  ;;  %v1105_v33 = vadd.f32 %v1096_v14, %v383_v32  ;;  %v3597_v10 = vld [vmem:[#allocation2 + $0xa4] ss:$16 sps:$4 sm:$0xff]   ;;  %v3603_v13 = vld [vmem:[#allocation2 + $0xa0] ss:$16 sps:$4 sm:$0xff]  }
 0x51a   :  { %v1104_v20 = vadd.f32 %v1057_v16, %v382_v15  ;;  %v1059_v22 = vpop.f32.mrb[18].mxu0  ;;  %v1100_v24 = vpop.f32.mrb[18].mxu1  ;;  %v1106_v35 = vadd.f32 %v1098_v19, %v384_v37  ;;  %v3605_v14 = vld [vmem:[#allocation2 + $0xa8] ss:$16 sps:$4 sm:$0xff]   ;;  %1559 = vmatprep.subr.bf16.mxu1 %v3597_v10  ;;  %v3609_v15 = vld [vmem:[#allocation2 + $0xc4] ss:$16 sps:$4 sm:$0xff]  }
 0x51b   :  { %v2310_v23 = vmul.f32 -1.442695, %v1103_v18  ;;  %v1060_v53 = vpop.f32.mrb[19].mxu0  ;;  %v1101_v25 = vpop.f32.mrb[19].mxu1  ;;  %v2312_v0 = vmul.f32 -1.442695, %v1105_v33  ;;  %1560 = vmatpush1.bf16.msra.mxu1 %v3603_v13 }
 0x51c   :  { %v2311_v31 = vmul.f32 -1.442695, %v1104_v20  ;;  %v3611_v18 = vld [vmem:[#allocation2 + $0xcc] ss:$16 sps:$4 sm:$0xff]   ;;  %v3615_v16 = vld [vmem:[#allocation2 + $0xc0] ss:$16 sps:$4 sm:$0xff]   ;;  %1561 = vmatprep.subr.bf16.mxu1 %v3609_v15 }
 0x51d   :  { %2715 = vpow2.f32 %v2310_v23  ;;  %v3617_v19 = vld [vmem:[#allocation2 + $0xc8] ss:$16 sps:$4 sm:$0xff]   ;;  %v3623_v20 = vld [vmem:[#allocation2 + $0xec] ss:$16 sps:$4 sm:$0xff]   ;;  %v2313_v24 = vld [vmem:[%s3979_s7] ss:$0 sm:$0xff] }
 0x51e   :  { %2717 = vpow2.f32 %v2311_v31  ;;  %4104 = vst [vmem:[#allocation6_spill] sm:$0xff] %v3623_v20  ;;  %v3629_v22 = vld [vmem:[#allocation2 + $0xe8] ss:$16 sps:$4 sm:$0xff]   ;;  %v2216_v37 = vld [vmem:[%s3973_s1] sm:$0xff] }
 0x51f   :  { %2719 = vtanh.f32 %v1106_v35  ;;  %1562 = vmatpush1.bf16.msra.mxu1 %v3615_v16  ;;  %4106 = vst [vmem:[#allocation14_spill] sm:$0xff] %v3629_v22 }
 0x520   :  { %2721 = vpow2.f32 %v2312_v0  ;;  %1563 = vmatprep.subr.bf16.mxu1 %v3621_v57 }
 0x523   :  { %1564 = vmatpush1.bf16.msra.mxu1 %v3627_v21 }
 0x524   :  { %1660 = vmatprep.subr.bf16.mxu1 %v3539_v58 }
 0x526   :  { %1582 = vmatmul.mubr.bf16.vlgmr.msra.gmra.mrb[20].mxu1 %v4067_v28 }
 0x527   :  { %v2716_v59 = vpop.eup %2715  ;;  %1661 = vmatpush1.bf16.msra.mxu1 %v3541_v1  ;;  %1692 = vmatprep.mubr.bf16.mxu1 %v4067_v28 }
 0x528   :  { %v1116_v42 = vadd.f32 1.0, %v2716_v59  ;;  %v2718_v51 = vpop.eup %2717  ;;  %1662 = vmatprep.subr.bf16.mxu1 %v3545_v49 }
 0x529   :  { %v1117_v50 = vadd.f32 1.0, %v2718_v51  ;;  %v2720_v38 = vpop.eup %2719 }
 0x52a   :  { %2723 = vrcp.f32 %v1116_v42  ;;  %v2722_v47 = vpop.eup %2721  ;;  %v2218_v42 = vld [vmem:[%s3973_s1 + $0x10] sm:$0xff] }
 0x52b   :  { %2725 = vrcp.f32 %v1117_v50  ;;  %v1118_v48 = vadd.f32 1.0, %v2722_v47  ;;  %1663 = vmatpush1.bf16.msra.mxu1 %v3555_v52  ;;  %v2219_v47 = vld [vmem:[%s3973_s1 + $0x18] sm:$0xff] }
 0x52c   :  { %1664 = vmatprep.subr.bf16.mxu1 %v3561_v43 }
 0x52d   :  { %2727 = vrcp.f32 %v1118_v48  ;;  %v4107_v48 = vld [vmem:[#allocation8_spill] sm:$0xff] }
 0x52f   :  { %1665 = vmatpush1.bf16.msra.mxu1 %v3567_v46 }
 0x530   :  { %1666 = vmatprep.subr.bf16.mxu1 %v3573_v39 }
 0x533   :  { %1667 = vmatpush1.bf16.msra.mxu1 %v3579_v6 }
 0x534   :  { %v2724_v2 = vpop.eup %2723  ;;  %1668 = vmatprep.subr.bf16.mxu1 %v3585_v9 }
 0x535   :  { %v1127_v61 = vmul.f32 %v2724_v2, %v2720_v38  ;;  %v2726_v54 = vpop.eup %2725 }
 0x536   :  { %v1126_v56 = vmul.f32 %v2726_v54, %v3459_v17  ;;  %v3551_v17 = vld [vmem:[#allocation2 + $0x2c] ss:$16 sps:$4 sm:$0xff]   ;;  %v1236_v54 = vld [vmem:[%s3980_s8] sm:$0xff] }
 0x537   :  { %v2728_v45 = vpop.eup %2727  ;;  %1669 = vmatpush1.bf16.msra.mxu1 %v3591_v7 }
 0x538   :  { %v1128_v63 = vadd.f32 %v1127_v61, %v1126_v56  ;;  %1670 = vmatprep.subr.bf16.mxu1 %v3597_v10  ;;  %v1268_v56 = vrot.slane %v1236_v54, %v4107_v48 }
 0x53a   :  { %2729 = vtanh.f32 %v1128_v63  ;;  %v4108_v63 = vld [vmem:[#allocation13_spill] sm:$0xff] }
 0x53b   :  { %1671 = vmatpush1.bf16.msra.mxu1 %v3603_v13 }
 0x53c   :  { %1672 = vmatprep.subr.bf16.mxu1 %v3609_v15 }
 0x53f   :  { %1673 = vmatpush1.bf16.msra.mxu1 %v3615_v16 }
 0x540   :  { %1674 = vmatprep.subr.bf16.mxu1 %v3621_v57 }
 0x543   :  { %1675 = vmatpush1.bf16.msra.mxu1 %v3627_v21 }
 0x544   :  { %v2730_v40 = vpop.eup %2729  ;;  %1771 = vmatprep.subr.bf16.mxu1 %v3539_v58 }
 0x545   :  { %v1130_v41 = vmul.f32 %v2730_v40, %v2728_v45  ;;  %v1272_v45 = vrot.slane %v1236_v54, %v4108_v63  ;;  %v4109_v40 = vld [vmem:[#allocation9_spill] sm:$0xff] }
 0x547   :  { %2433 = vmatmul.mubr.f32.vlgmr.msra.gmra.mrb[20].mxu0 %v1130_v41  ;;  %v1276_v41 = vrot.slane %v1236_v54, %v4109_v40  ;;  %v4114_v40 = vld [vmem:[#allocation7_spill] sm:$0xff] }
 0x548   :  { %1622 = vmatprep.mubr.bf16.mxu0 %v4067_v28  ;;  %1591 = vmatpush1.bf16.msra.mxu0 %v3547_v44 }
 0x549   :  { %1592 = vmatprep.subr.bf16.mxu0 %v3551_v17 }
 0x54c   :  { %1593 = vmatpush1.bf16.msra.mxu0 %v3557_v60 }
 0x54d   :  { %1594 = vmatprep.subr.bf16.mxu0 %v3563_v62 }
 0x550   :  { %1595 = vmatpush1.bf16.msra.mxu0 %v3569_v36 }
 0x551   :  { %1596 = vmatprep.subr.bf16.mxu0 %v3575_v4 }
 0x554   :  { %1597 = vmatpush1.bf16.msra.mxu0 %v3581_v8 }
 0x555   :  { %1598 = vmatprep.subr.bf16.mxu0 %v3587_v5 }
 0x558   :  { %1599 = vmatpush1.bf16.msra.mxu0 %v3593_v11 }
 0x559   :  { %1600 = vmatprep.subr.bf16.mxu0 %v3599_v12 }
 0x55c   :  { %1601 = vmatpush1.bf16.msra.mxu0 %v3605_v14 }
 0x55d   :  { %1602 = vmatprep.subr.bf16.mxu0 %v3611_v18 }
 0x560   :  { %1603 = vmatpush1.bf16.msra.mxu0 %v3617_v19 }
 0x561   :  { %1604 = vmatprep.subr.bf16.mxu0 %v3623_v20 }
 0x564   :  { %1605 = vmatpush1.bf16.msra.mxu0 %v3629_v22 }
 0x565   :  { %1701 = vmatprep.subr.bf16.mxu0 %v3543_v55 }
 0x567   :  { %1623 = vmatmul.mubr.bf16.vlgmr.msra.gmra.mrb[24].mxu0 %v4067_v28 }
 0x568   :  { %1702 = vmatpush1.bf16.msra.mxu0 %v3547_v44  ;;  %1733 = vmatprep.mubr.bf16.mxu0 %v4067_v28 }
 0x569   :  { %1703 = vmatprep.subr.bf16.mxu0 %v3551_v17 }
 0x56c   :  { %1704 = vmatpush1.bf16.msra.mxu0 %v3557_v60 }
 0x56d   :  { %1705 = vmatprep.subr.bf16.mxu0 %v3563_v62 }
 0x570   :  { %1706 = vmatpush1.bf16.msra.mxu0 %v3569_v36 }
 0x571   :  { %1707 = vmatprep.subr.bf16.mxu0 %v3575_v4 }
 0x574   :  { %1708 = vmatpush1.bf16.msra.mxu0 %v3581_v8 }
 0x575   :  { %1709 = vmatprep.subr.bf16.mxu0 %v3587_v5 }
 0x578   :  { %1710 = vmatpush1.bf16.msra.mxu0 %v3593_v11 }
 0x579   :  { %1711 = vmatprep.subr.bf16.mxu0 %v3599_v12 }
 0x57c   :  { %1712 = vmatpush1.bf16.msra.mxu0 %v3605_v14 }
 0x57d   :  { %1713 = vmatprep.subr.bf16.mxu0 %v3611_v18 }
 0x580   :  { %1714 = vmatpush1.bf16.msra.mxu0 %v3617_v19 }
 0x581   :  { %1715 = vmatprep.subr.bf16.mxu0 %v3623_v20 }
 0x584   :  { %1716 = vmatpush1.bf16.msra.mxu0 %v3629_v22 }
 0x585   :  { %1812 = vmatprep.subr.bf16.mxu0 %v3543_v55 }
 0x5f9   :  { %v1583_v35 = vpop.f32.mrb[20].mxu1 }
 0x5fa   :  { %v1585_v0 = vpop.f32.mrb[21].mxu1 }
 0x5fb   :  { %v1587_v59 = vpop.f32.mrb[22].mxu1 }
 0x5fc   :  { %v1588_v51 = vpop.f32.mrb[23].mxu1 }
 0x61a   :  { %v1220_v23 = vpop.f32.mrb[20].mxu0 }
 0x61b   :  { %v1221_v34 = vadd.f32 %v2313_v24, %v1220_v23  ;;  %v2434_v27 = vpop.f32.mrb[21].mxu0  ;;  %v4110_v24 = vld [vmem:[#allocation10_spill] sm:$0xff] }
 0x61c   :  { %v1316_v23 = vrot.slane %v1236_v54, %v4110_v24 }
 0x61d   :  { %v1225_v53 = vmul.f32 0.5, %v1221_v34  ;;  %1235 = vst.msk [vmem:[%s3986_s14] sm:$0xff] %vm1234_vm1, %v1221_v34 }
 0x61f   :  { %v1226_v25 = vmul.f32 1.442695, %v1225_v53  ;;  %v1237_v53 = vld [vmem:[%s3982_s10] sm:$0xf] }
 0x620   :  { %v1242_v59 = vrot.slane %v1237_v53, %v4107_v48 }
 0x621   :  { %2731 = vpow2.f32 %v1226_v25  ;;  %v1288_v25 = vrot.slane %v1268_v56, %v4107_v48  ;;  %v1327_v56 = vsub.s32 7, %v4114_v40 }
 0x623   :  { %v1328_v21 = vrot.slane %v1236_v54, %v1327_v56 }
 0x62b   :  { %v2732_v31 = vpop.eup %2731 }
 0x62c   :  { %1229 = vrot.lane.b32.xlu0 %v2732_v31, %s2846_s9  ;;  %v1292_v31 = vrot.slane %v1272_v45, %v4107_v48 }
 0x63a   :  { %v1624_v50 = vpop.f32.mrb[24].mxu0 }
 0x63b   :  { %v1626_v38 = vpop.f32.mrb[25].mxu0 }
 0x63c   :  { %v1628_v2 = vpop.f32.mrb[26].mxu0 }
 0x63d   :  { %v1629_v61 = vpop.f32.mrb[27].mxu0 }
 0x69e   :  { %v1230_v30 = vpop.permute.xlu0 %1229 }
 0x69f   :  { %v1232_v32 = vmul.f32 %v1230_v30, %v1224_v29  ;;  %v4112_v29 = vld [vmem:[#allocation15_spill] sm:$0xff] }
 0x6a0   :  { %v1280_v30 = vrot.slane %v1236_v54, %v4112_v29  ;;  %v1250_v29 = vrot.slane %v1237_v53, %v4108_v63 }
 0x6a1   :  { %v1233_v33 = vadd.f32 %v1232_v32, %v1221_v34  ;;  %v4111_v34 = vld [vmem:[#allocation26_spill] sm:$0xff]  ;;  %v1296_v32 = vrot.slane %v1276_v41, %v4107_v48 }
 0x6a2   :  { %v1320_v27 = vrot.slane %v1236_v54, %v4111_v34  ;;  %v1300_v41 = vrot.slane %v1280_v30, %v4107_v48 }
 0x6a3   :  { %1310 = vperm.xlu0 %2549, %v1233_v33   ;;  %1261 = vperm.xlu1 %2553, %v1233_v33   ;;  %v1336_v33 = vrot.slane %v1316_v23, %v4110_v24 }
 0x6a7   :  { %2223 = vperm.xlu1 %2553, %v2216_v37   ;;  %2554 = vset.pattern.permute.xlu0 %v4067_v28  ;;  %v1340_v37 = vrot.slane %v1320_v27, %v4110_v24 }
 0x6ab   :  { %2233 = vperm.xlu1 %2553, %v2218_v42   ;;  %v1246_v42 = vrot.slane %v1237_v53, %v4110_v24 }
 0x6af   :  { %2238 = vperm.xlu1 %2553, %v2219_v47   ;;  %v4113_v47 = vld [vmem:[#allocation11_spill] sm:$0xff] }
 0x6b0   :  { %v1324_v2 = vrot.slane %v1236_v54, %v4113_v47 }
 0x6b2   :  { %v1344_v22 = vrot.slane %v1324_v2, %v4110_v24 }
 0x722   :  { %v1262_v51 = vpop.permute.xlu1 %1261  ;;  %v1311_v61 = vpop.permute.xlu0 %1310 }
 0x723   :  { %v1301_v3 = vmul.f32 %v1288_v25, %v1262_v51  ;;  %v1302_v45 = vmul.f32 %v1292_v31, %v1262_v51  ;;  %v1303_v26 = vmul.f32 %v1296_v32, %v1262_v51  ;;  %v1349_v23 = vmul.f32 %v1336_v33, %v1311_v61 }
 0x724   :  { %v1350_v55 = vmul.f32 %v1340_v37, %v1311_v61  ;;  %v1254_v25 = vrot.slane %v1237_v53, %v4111_v34  ;;  %v1304_v31 = vmul.f32 %v1300_v41, %v1262_v51  ;;  %v1351_v30 = vmul.f32 %v1344_v22, %v1311_v61  ;;  %v4116_v41 = vld [vmem:[#allocation6_spill] sm:$0xff] }
 0x725   :  { %v1305_v27 = vadd.f32 %v1301_v3, %v1242_v59  ;;  %v1306_v58 = vadd.f32 %v1302_v45, %v1246_v42  ;;  %v1307_v57 = vadd.f32 %v1303_v26, %v1250_v29  ;;  %v1348_v32 = vrot.slane %v1328_v21, %v4110_v24  ;;  %v4115_v29 = vld [vmem:[#allocation5_spill] sm:$0xff] }
 0x726   :  { %v1308_v54 = vadd.f32 %v1304_v31, %v1254_v25  ;;  %v4119_v25 = vld [vmem:[#allocation20_spill] sm:$0xff]  ;;  %v4120_v31 = vld [vmem:[#allocation23_spill] sm:$0xff] }
 0x727   :  { %v3716_v20 = vadd.f32 %v1349_v23, %v1305_v27  ;;  %v3718_v47 = vadd.f32 %v1350_v55, %v1306_v58  ;;  %v3724_v37 = vadd.f32 %v1351_v30, %v1307_v57  ;;  %v1352_v58 = vmul.f32 %v1348_v32, %v1311_v61  ;;  %v4117_v23 = vld [vmem:[#allocation12_spill] sm:$0xff]  ;;  %v4118_v27 = vld [vmem:[#allocation14_spill] sm:$0xff] }
 0x729   :  { %v1631_v63 = vadd.f32 %v1583_v35, %v3716_v20  ;;  %v1632_v48 = vadd.f32 %v1585_v0, %v3718_v47  ;;  %v1633_v26 = vadd.f32 %v1624_v50, %v3724_v37  ;;  %v3727_v55 = vadd.f32 %v1352_v58, %v1308_v54 }
 0x72b   :  { %v2346_v3 = vmul.f32 -1.442695, %v1631_v63  ;;  %v2347_v33 = vmul.f32 -1.442695, %v1632_v48  ;;  %v2348_v34 = vmul.f32 -1.442695, %v1633_v26  ;;  %v1634_v35 = vadd.f32 %v1626_v38, %v3727_v55 }
 0x72d   :  { %2733 = vpow2.f32 %v2346_v3 }
 0x72e   :  { %2735 = vpow2.f32 %v2347_v33 }
 0x72f   :  { %2737 = vpow2.f32 %v2348_v34 }
 0x730   :  { %2739 = vtanh.f32 %v1634_v35 }
 0x737   :  { %v2734_v53 = vpop.eup %2733 }
 0x738   :  { %v2736_v0 = vpop.eup %2735  ;;  %v1644_v22 = vadd.f32 1.0, %v2734_v53 }
 0x739   :  { %v1645_v21 = vadd.f32 1.0, %v2736_v0  ;;  %v2738_v57 = vpop.eup %2737 }
 0x73a   :  { %2741 = vrcp.f32 %v1644_v22  ;;  %v2740_v24 = vpop.eup %2739  ;;  %v1646_v51 = vadd.f32 1.0, %v2738_v57 }
 0x73b   :  { %2743 = vrcp.f32 %v1645_v21 }
 0x73c   :  { %2745 = vrcp.f32 %v1646_v51 }
 0x744   :  { %v2742_v59 = vpop.eup %2741 }
 0x745   :  { %v2744_v42 = vpop.eup %2743  ;;  %v1655_v2 = vmul.f32 %v2742_v59, %v2740_v24 }
 0x746   :  { %v1654_v50 = vmul.f32 0.0, %v2744_v42  ;;  %v2746_v38 = vpop.eup %2745 }
 0x748   :  { %v3730_v61 = vadd.f32 %v1655_v2, %v1654_v50 }
 0x74a   :  { %2747 = vtanh.f32 %v3730_v61 }
 0x754   :  { %v2748_v40 = vpop.eup %2747 }
 0x755   :  { %v3733_v56 = vmul.f32 %v2748_v40, %v2746_v38 }
 0x757   :  { %v1659_v45 = vpack.c.bf16 %v3733_v56, %v3733_v56 }
 0x759   :  { %1693 = vmatmul.mubr.bf16.vlgmr.msra.gmra.mrb[24].mxu1 %v1659_v45  ;;  %1734 = vmatmul.mubr.bf16.vlgmr.msra.gmra.mrb[28].mxu0 %v1659_v45 }
 0x75a   :  { %1772 = vmatpush1.bf16.msra.mxu1 %v3541_v1  ;;  %1813 = vmatpush1.bf16.msra.mxu0 %v3547_v44 }
 0x75b   :  { %1773 = vmatprep.subr.bf16.mxu1 %v3545_v49  ;;  %1814 = vmatprep.subr.bf16.mxu0 %v3551_v17 }
 0x75c   :  { %1803 = vmatprep.mubr.bf16.mxu1 %v4067_v28  ;;  %1844 = vmatprep.mubr.bf16.mxu0 %v4067_v28 }
 0x75e   :  { %1774 = vmatpush1.bf16.msra.mxu1 %v3555_v52  ;;  %1815 = vmatpush1.bf16.msra.mxu0 %v3557_v60 }
 0x75f   :  { %1775 = vmatprep.subr.bf16.mxu1 %v3561_v43  ;;  %1816 = vmatprep.subr.bf16.mxu0 %v3563_v62 }
 0x762   :  { %1776 = vmatpush1.bf16.msra.mxu1 %v3567_v46  ;;  %1817 = vmatpush1.bf16.msra.mxu0 %v3569_v36 }
 0x763   :  { %1777 = vmatprep.subr.bf16.mxu1 %v3573_v39  ;;  %1818 = vmatprep.subr.bf16.mxu0 %v3575_v4 }
 0x766   :  { %1778 = vmatpush1.bf16.msra.mxu1 %v3579_v6  ;;  %1819 = vmatpush1.bf16.msra.mxu0 %v3581_v8 }
 0x767   :  { %1779 = vmatprep.subr.bf16.mxu1 %v3585_v9  ;;  %1820 = vmatprep.subr.bf16.mxu0 %v3587_v5 }
 0x76a   :  { %1780 = vmatpush1.bf16.msra.mxu1 %v3591_v7  ;;  %1821 = vmatpush1.bf16.msra.mxu0 %v3593_v11 }
 0x76b   :  { %1781 = vmatprep.subr.bf16.mxu1 %v3597_v10  ;;  %1822 = vmatprep.subr.bf16.mxu0 %v3599_v12 }
 0x76e   :  { %1782 = vmatpush1.bf16.msra.mxu1 %v3603_v13  ;;  %1823 = vmatpush1.bf16.msra.mxu0 %v3605_v14 }
 0x76f   :  { %1783 = vmatprep.subr.bf16.mxu1 %v3609_v15  ;;  %1824 = vmatprep.subr.bf16.mxu0 %v3611_v18 }
 0x772   :  { %1784 = vmatpush1.bf16.msra.mxu1 %v3615_v16  ;;  %1825 = vmatpush1.bf16.msra.mxu0 %v3617_v19 }
 0x773   :  { %1785 = vmatprep.subr.bf16.mxu1 %v4115_v29  ;;  %1826 = vmatprep.subr.bf16.mxu0 %v4116_v41 }
 0x776   :  { %1786 = vmatpush1.bf16.msra.mxu1 %v4117_v23  ;;  %1827 = vmatpush1.bf16.msra.mxu0 %v4118_v27 }
 0x777   :  { %1882 = vmatprep.subr.bf16.mxu1 %v4119_v25  ;;  %1923 = vmatprep.subr.bf16.mxu0 %v4120_v31 }
 0x82c   :  { %v1694_v63 = vpop.f32.mrb[24].mxu1  ;;  %v1735_v48 = vpop.f32.mrb[28].mxu0 }
 0x82d   :  { %v1742_v30 = vadd.f32 %v1694_v63, %v3716_v20  ;;  %v1696_v32 = vpop.f32.mrb[25].mxu1  ;;  %v1737_v3 = vpop.f32.mrb[29].mxu0  ;;  %v1744_v0 = vadd.f32 %v1735_v48, %v3724_v37 }
 0x82e   :  { %v1743_v33 = vadd.f32 %v1696_v32, %v3718_v47  ;;  %v1698_v54 = vpop.f32.mrb[26].mxu1  ;;  %v1739_v58 = vpop.f32.mrb[30].mxu0  ;;  %v1745_v22 = vadd.f32 %v1737_v3, %v3727_v55 }
 0x82f   :  { %v2349_v26 = vmul.f32 -1.442695, %v1742_v30  ;;  %v1699_v34 = vpop.f32.mrb[27].mxu1  ;;  %v1740_v35 = vpop.f32.mrb[31].mxu0  ;;  %v2351_v21 = vmul.f32 -1.442695, %v1744_v0 }
 0x830   :  { %v2350_v53 = vmul.f32 -1.442695, %v1743_v33 }
 0x831   :  { %2749 = vpow2.f32 %v2349_v26 }
 0x832   :  { %2751 = vpow2.f32 %v2350_v53 }
 0x833   :  { %2753 = vtanh.f32 %v1745_v22 }
 0x834   :  { %2755 = vpow2.f32 %v2351_v21 }
 0x83b   :  { %v2750_v57 = vpop.eup %2749 }
 0x83c   :  { %v1755_v24 = vadd.f32 1.0, %v2750_v57  ;;  %v2752_v59 = vpop.eup %2751 }
 0x83d   :  { %v1756_v42 = vadd.f32 1.0, %v2752_v59  ;;  %v2754_v51 = vpop.eup %2753 }
 0x83e   :  { %2757 = vrcp.f32 %v1755_v24  ;;  %v2756_v2 = vpop.eup %2755 }
 0x83f   :  { %2759 = vrcp.f32 %v1756_v42  ;;  %v1757_v45 = vadd.f32 1.0, %v2756_v2 }
 0x841   :  { %2761 = vrcp.f32 %v1757_v45 }
 0x848   :  { %v2758_v50 = vpop.eup %2757 }
 0x849   :  { %v1766_v38 = vmul.f32 %v2758_v50, %v2754_v51  ;;  %v2760_v40 = vpop.eup %2759 }
 0x84a   :  { %v1765_v63 = vmul.f32 %v2760_v40, %v3730_v61 }
 0x84b   :  { %v2762_v30 = vpop.eup %2761 }
 0x84c   :  { %v3776_v48 = vadd.f32 %v1766_v38, %v1765_v63 }
 0x84e   :  { %2763 = vtanh.f32 %v3776_v48 }
 0x858   :  { %v2764_v32 = vpop.eup %2763 }
 0x859   :  { %v3779_v3 = vmul.f32 %v2764_v32, %v2762_v30 }
 0x85b   :  { %v1770_v33 = vpack.c.bf16 %v3779_v3, %v3779_v3 }
 0x85d   :  { %1804 = vmatmul.mubr.bf16.vlgmr.msra.gmra.mrb[28].mxu1 %v1770_v33  ;;  %1845 = vmatmul.mubr.bf16.vlgmr.msra.gmra.mrb[32].mxu0 %v1770_v33 }
 0x85e   :  { %1883 = vmatpush1.bf16.msra.mxu1 %v3541_v1  ;;  %1924 = vmatpush1.bf16.msra.mxu0 %v3547_v44 }
 0x85f   :  { %1884 = vmatprep.subr.bf16.mxu1 %v3545_v49  ;;  %1925 = vmatprep.subr.bf16.mxu0 %v3551_v17 }
 0x860   :  { %1914 = vmatprep.mubr.bf16.mxu1 %v4067_v28  ;;  %1955 = vmatprep.mubr.bf16.mxu0 %v4067_v28 }
 0x862   :  { %1885 = vmatpush1.bf16.msra.mxu1 %v3555_v52  ;;  %1926 = vmatpush1.bf16.msra.mxu0 %v3557_v60 }
 0x863   :  { %1886 = vmatprep.subr.bf16.mxu1 %v3561_v43  ;;  %1927 = vmatprep.subr.bf16.mxu0 %v3563_v62 }
 0x866   :  { %1887 = vmatpush1.bf16.msra.mxu1 %v3567_v46  ;;  %1928 = vmatpush1.bf16.msra.mxu0 %v3569_v36 }
 0x867   :  { %1888 = vmatprep.subr.bf16.mxu1 %v3573_v39  ;;  %1929 = vmatprep.subr.bf16.mxu0 %v3575_v4 }
 0x86a   :  { %1889 = vmatpush1.bf16.msra.mxu1 %v3579_v6  ;;  %1930 = vmatpush1.bf16.msra.mxu0 %v3581_v8 }
 0x86b   :  { %1890 = vmatprep.subr.bf16.mxu1 %v3585_v9  ;;  %1931 = vmatprep.subr.bf16.mxu0 %v3587_v5 }
 0x86e   :  { %1891 = vmatpush1.bf16.msra.mxu1 %v3591_v7  ;;  %1932 = vmatpush1.bf16.msra.mxu0 %v3593_v11 }
 0x86f   :  { %1892 = vmatprep.subr.bf16.mxu1 %v3597_v10  ;;  %1933 = vmatprep.subr.bf16.mxu0 %v3599_v12 }
 0x872   :  { %1893 = vmatpush1.bf16.msra.mxu1 %v3603_v13  ;;  %1934 = vmatpush1.bf16.msra.mxu0 %v3605_v14 }
 0x873   :  { %1894 = vmatprep.subr.bf16.mxu1 %v3609_v15  ;;  %1935 = vmatprep.subr.bf16.mxu0 %v3611_v18 }
 0x876   :  { %1895 = vmatpush1.bf16.msra.mxu1 %v3615_v16  ;;  %1936 = vmatpush1.bf16.msra.mxu0 %v3617_v19 }
 0x877   :  { %1896 = vmatprep.subr.bf16.mxu1 %v4115_v29  ;;  %1937 = vmatprep.subr.bf16.mxu0 %v4116_v41 }
 0x87a   :  { %1897 = vmatpush1.bf16.msra.mxu1 %v4117_v23  ;;  %1938 = vmatpush1.bf16.msra.mxu0 %v4118_v27 }
 0x87b   :  { %1993 = vmatprep.subr.bf16.mxu1 %v4119_v25  ;;  %2034 = vmatprep.subr.bf16.mxu0 %v4120_v31 }
 0x930   :  { %v1805_v61 = vpop.f32.mrb[28].mxu1  ;;  %v1846_v54 = vpop.f32.mrb[32].mxu0 }
 0x931   :  { %v1853_v58 = vadd.f32 %v1805_v61, %v3716_v20  ;;  %v1807_v26 = vpop.f32.mrb[29].mxu1  ;;  %v1848_v34 = vpop.f32.mrb[33].mxu0  ;;  %v1855_v25 = vadd.f32 %v1846_v54, %v3724_v37 }
 0x932   :  { %v1854_v35 = vadd.f32 %v1807_v26, %v3718_v47  ;;  %v1809_v53 = vpop.f32.mrb[30].mxu1  ;;  %v1850_v0 = vpop.f32.mrb[34].mxu0  ;;  %v1856_v31 = vadd.f32 %v1848_v34, %v3727_v55 }
 0x933   :  { %v2352_v22 = vmul.f32 -1.442695, %v1853_v58  ;;  %v1810_v21 = vpop.f32.mrb[31].mxu1  ;;  %v1851_v57 = vpop.f32.mrb[35].mxu0  ;;  %v2354_v59 = vmul.f32 -1.442695, %v1855_v25 }
 0x934   :  { %v2353_v24 = vmul.f32 -1.442695, %v1854_v35  ;;  %v2105_v21 = vld [vmem:[%s3983_s11 + $0x10] sm:$0xff]  ;;  %v2106_v57 = vld [vmem:[%s3983_s11 + $0x18] sm:$0xff]  ;;  %v4122_v25 = vmov 0.0  }
 0x935   :  { %2765 = vpow2.f32 %v2352_v22 }
 0x936   :  { %2767 = vpow2.f32 %v2353_v24  ;;  %v2510_v24 = vpack.c.bf16 %v2106_v57, %v2105_v21 }
 0x937   :  { %2769 = vtanh.f32 %v1856_v31  ;;  %v2107_v31 = vld [vmem:[%s3983_s11 + $0x20] sm:$0xff] }
 0x938   :  { %2771 = vpow2.f32 %v2354_v59  ;;  %v2108_v59 = vld [vmem:[%s3983_s11 + $0x28] sm:$0xff] }
 0x93f   :  { %v2766_v42 = vpop.eup %2765 }
 0x940   :  { %v1866_v51 = vadd.f32 1.0, %v2766_v42  ;;  %v2768_v2 = vpop.eup %2767  ;;  %v2513_v42 = vpack.c.bf16 %v2108_v59, %v2107_v31 }
 0x941   :  { %v1867_v50 = vadd.f32 1.0, %v2768_v2  ;;  %v2770_v38 = vpop.eup %2769  ;;  %v2110_v2 = vld [vmem:[%s3983_s11 + $0x38] sm:$0xff] }
 0x942   :  { %2773 = vrcp.f32 %v1866_v51  ;;  %v2772_v40 = vpop.eup %2771  ;;  %v2109_v51 = vld [vmem:[%s3983_s11 + $0x30] sm:$0xff] }
 0x943   :  { %2775 = vrcp.f32 %v1867_v50  ;;  %v1868_v32 = vadd.f32 1.0, %v2772_v40  ;;  %v2516_v50 = vpack.c.bf16 %v2110_v2, %v2109_v51  ;;  %v2112_v40 = vld [vmem:[%s3983_s11 + $0x48] sm:$0xff] }
 0x945   :  { %2777 = vrcp.f32 %v1868_v32 }
 0x94c   :  { %v2774_v45 = vpop.eup %2773 }
 0x94d   :  { %v1877_v63 = vmul.f32 %v2774_v45, %v2770_v38  ;;  %v2776_v30 = vpop.eup %2775  ;;  %v2111_v38 = vld [vmem:[%s3983_s11 + $0x40] sm:$0xff] }
 0x94e   :  { %v1876_v33 = vmul.f32 %v2776_v30, %v3776_v48  ;;  %v2104_v48 = vld [vmem:[%s3983_s11 + $0x8] sm:$0xff]  ;;  %v2519_v45 = vpack.c.bf16 %v2112_v40, %v2111_v38  ;;  %v2114_v30 = vld [vmem:[%s3983_s11 + $0x58] sm:$0xff] }
 0x94f   :  { %v2778_v54 = vpop.eup %2777 }
 0x950   :  { %v3822_v61 = vadd.f32 %v1877_v63, %v1876_v33  ;;  %v2113_v63 = vld [vmem:[%s3983_s11 + $0x50] sm:$0xff]  ;;  %v2115_v33 = vld [vmem:[%s3983_s11 + $0x60] sm:$0xff] }
 0x951   :  { %v2522_v32 = vpack.c.bf16 %v2114_v30, %v2113_v63 }
 0x952   :  { %2779 = vtanh.f32 %v3822_v61 }
 0x95c   :  { %v2780_v58 = vpop.eup %2779 }
 0x95d   :  { %v3825_v26 = vmul.f32 %v2780_v58, %v2778_v54  ;;  %v2117_v58 = vld [vmem:[%s3983_s11 + $0x70] sm:$0xff] }
 0x95f   :  { %v1881_v34 = vpack.c.bf16 %v3825_v26, %v3825_v26 }
 0x961   :  { %1915 = vmatmul.mubr.bf16.vlgmr.msra.gmra.mrb[32].mxu1 %v1881_v34  ;;  %1956 = vmatmul.mubr.bf16.vlgmr.msra.gmra.mrb[36].mxu0 %v1881_v34  ;;  %v2118_v34 = vld [vmem:[%s3983_s11 + $0x78] sm:$0xff] }
 0x962   :  { %1994 = vmatpush1.bf16.msra.mxu1 %v3541_v1  ;;  %2035 = vmatpush1.bf16.msra.mxu0 %v3547_v44  ;;  %v2217_v1 = vld [vmem:[%s3973_s1 + $0x8] sm:$0xff] }
 0x963   :  { %1995 = vmatprep.subr.bf16.mxu1 %v3545_v49  ;;  %2036 = vmatprep.subr.bf16.mxu0 %v3551_v17 }
 0x964   :  { %2025 = vmatprep.mubr.bf16.mxu1 %v4067_v28  ;;  %2066 = vmatprep.mubr.bf16.mxu0 %v4067_v28  ;;  %v4121_v28 = vmov 0.0|0.0  }
 0x965   :  { %2228 = vperm.xlu0 %2554, %v2217_v1   ;;  %v2528_v1 = vpack.c.bf16 %v2118_v34, %v2117_v58 }
 0x966   :  { %1996 = vmatpush1.bf16.msra.mxu1 %v3555_v52  ;;  %2037 = vmatpush1.bf16.msra.mxu0 %v3557_v60 }
 0x967   :  { %1997 = vmatprep.subr.bf16.mxu1 %v3561_v43  ;;  %2038 = vmatprep.subr.bf16.mxu0 %v3563_v62 }
 0x96a   :  { %1998 = vmatpush1.bf16.msra.mxu1 %v3567_v46  ;;  %2039 = vmatpush1.bf16.msra.mxu0 %v3569_v36 }
 0x96b   :  { %1999 = vmatprep.subr.bf16.mxu1 %v3573_v39  ;;  %2040 = vmatprep.subr.bf16.mxu0 %v3575_v4 }
 0x96e   :  { %2000 = vmatpush1.bf16.msra.mxu1 %v3579_v6  ;;  %2041 = vmatpush1.bf16.msra.mxu0 %v3581_v8 }
 0x96f   :  { %2001 = vmatprep.subr.bf16.mxu1 %v3585_v9  ;;  %2042 = vmatprep.subr.bf16.mxu0 %v3587_v5 }
 0x972   :  { %2002 = vmatpush1.bf16.msra.mxu1 %v3591_v7  ;;  %2043 = vmatpush1.bf16.msra.mxu0 %v3593_v11 }
 0x973   :  { %2003 = vmatprep.subr.bf16.mxu1 %v3597_v10  ;;  %2044 = vmatprep.subr.bf16.mxu0 %v3599_v12 }
 0x976   :  { %2004 = vmatpush1.bf16.msra.mxu1 %v3603_v13  ;;  %2045 = vmatpush1.bf16.msra.mxu0 %v3605_v14 }
 0x977   :  { %2005 = vmatprep.subr.bf16.mxu1 %v3609_v15  ;;  %2046 = vmatprep.subr.bf16.mxu0 %v3611_v18 }
 0x97a   :  { %2006 = vmatpush1.bf16.msra.mxu1 %v3615_v16  ;;  %2047 = vmatpush1.bf16.msra.mxu0 %v3617_v19 }
 0x97b   :  { %2007 = vmatprep.subr.bf16.mxu1 %v4115_v29  ;;  %2048 = vmatprep.subr.bf16.mxu0 %v4116_v41 }
 0x97e   :  { %2008 = vmatpush1.bf16.msra.mxu1 %v4117_v23  ;;  %2049 = vmatpush1.bf16.msra.mxu0 %v4118_v27  ;;  %v2103_v27 = vld [vmem:[%s3983_s11] sm:$0xff] }
 0x97f   :  { %2506 = vmatprep.subr.bf16.mxu1 %v4121_v28  ;;  %v2507_v0 = vpack.c.bf16 %v2104_v48, %v2103_v27 }
 0x9e4   :  { %v2229_v27 = vpop.permute.xlu0 %2228 }
 0xa34   :  { %v1916_v49 = vpop.f32.mrb[32].mxu1  ;;  %v1957_v44 = vpop.f32.mrb[36].mxu0 }
 0xa35   :  { %v1964_v17 = vadd.f32 %v1916_v49, %v3716_v20  ;;  %v1918_v52 = vpop.f32.mrb[33].mxu1  ;;  %v1959_v60 = vpop.f32.mrb[37].mxu0  ;;  %v1966_v8 = vadd.f32 %v1957_v44, %v3724_v37 }
 0xa36   :  { %v1965_v43 = vadd.f32 %v1918_v52, %v3718_v47  ;;  %v1920_v62 = vpop.f32.mrb[34].mxu1  ;;  %v1961_v46 = vpop.f32.mrb[38].mxu0  ;;  %v1967_v9 = vadd.f32 %v1959_v60, %v3727_v55 }
 0xa37   :  { %v2355_v36 = vmul.f32 -1.442695, %v1964_v17  ;;  %v1921_v39 = vpop.f32.mrb[35].mxu1  ;;  %v1962_v4 = vpop.f32.mrb[39].mxu0  ;;  %v2357_v5 = vmul.f32 -1.442695, %v1966_v8 }
 0xa38   :  { %v2356_v6 = vmul.f32 -1.442695, %v1965_v43 }
 0xa39   :  { %2781 = vpow2.f32 %v2355_v36 }
 0xa3a   :  { %2783 = vpow2.f32 %v2356_v6 }
 0xa3b   :  { %2785 = vtanh.f32 %v1967_v9 }
 0xa3c   :  { %2787 = vpow2.f32 %v2357_v5 }
 0xa43   :  { %v2782_v7 = vpop.eup %2781 }
 0xa44   :  { %v1977_v11 = vadd.f32 1.0, %v2782_v7  ;;  %v2784_v10 = vpop.eup %2783 }
 0xa45   :  { %v1978_v12 = vadd.f32 1.0, %v2784_v10  ;;  %v2786_v13 = vpop.eup %2785 }
 0xa46   :  { %2789 = vrcp.f32 %v1977_v11  ;;  %v2788_v14 = vpop.eup %2787 }
 0xa47   :  { %2791 = vrcp.f32 %v1978_v12  ;;  %v1979_v19 = vadd.f32 1.0, %v2788_v14 }
 0xa49   :  { %2793 = vrcp.f32 %v1979_v19  ;;  %v2224_v19 = vpop.permute.xlu1 %2223 }
 0xa50   :  { %v2790_v15 = vpop.eup %2789 }
 0xa51   :  { %v1988_v18 = vmul.f32 %v2790_v15, %v2786_v13  ;;  %v2792_v16 = vpop.eup %2791 }
 0xa52   :  { %v1987_v29 = vmul.f32 %v2792_v16, %v3822_v61  ;;  %v2116_v61 = vld [vmem:[%s3983_s11 + $0x68] sm:$0xff] }
 0xa53   :  { %v2794_v23 = vpop.eup %2793  ;;  %v2525_v54 = vpack.c.bf16 %v2116_v61, %v2115_v33 }
 0xa54   :  { %v3870_v41 = vadd.f32 %v1988_v18, %v1987_v29 }
 0xa56   :  { %2795 = vtanh.f32 %v3870_v41 }
 0xa60   :  { %v2796_v35 = vpop.eup %2795 }
 0xa61   :  { %v1991_v53 = vmul.f32 %v2796_v35, %v2794_v23 }
 0xa63   :  { %v1992_v22 = vpack.c.bf16 %v1991_v53, %v1991_v53 }
 0xa65   :  { %2026 = vmatmul.mubr.bf16.vlgmr.msra.gmra.mrb[36].mxu1 %v1992_v22  ;;  %2067 = vmatmul.mubr.bf16.vlgmr.msra.gmra.mrb[40].mxu0 %v1992_v22 }
 0xa66   :  { %2508 = vmatpush3.bf16.msra.mxu1 %v2507_v0  ;;  %2467 = vmatprep.mubr.msk.f32.mxu1 %vm2844_vm0, %v4122_v25 }
 0xa67   :  { %2509 = vmatprep.subr.bf16.mxu1 %v4121_v28 }
 0xa6a   :  { %2511 = vmatpush3.bf16.msra.mxu1 %v2510_v24 }
 0xa6b   :  { %2512 = vmatprep.subr.bf16.mxu1 %v4121_v28 }
 0xa6e   :  { %2514 = vmatpush3.bf16.msra.mxu1 %v2513_v42 }
 0xa6f   :  { %2515 = vmatprep.subr.bf16.mxu1 %v4121_v28 }
 0xa72   :  { %2517 = vmatpush3.bf16.msra.mxu1 %v2516_v50 }
 0xa73   :  { %2518 = vmatprep.subr.bf16.mxu1 %v4121_v28 }
 0xa76   :  { %2520 = vmatpush3.bf16.msra.mxu1 %v2519_v45 }
 0xa77   :  { %2521 = vmatprep.subr.bf16.mxu1 %v4121_v28 }
 0xa7a   :  { %2523 = vmatpush3.bf16.msra.mxu1 %v2522_v32 }
 0xa7b   :  { %2524 = vmatprep.subr.bf16.mxu1 %v4121_v28 }
 0xa7e   :  { %2526 = vmatpush3.bf16.msra.mxu1 %v2525_v54 }
 0xa7f   :  { %2527 = vmatprep.subr.bf16.mxu1 %v4121_v28 }
 0xa82   :  { %2529 = vmatpush3.bf16.msra.mxu1 %v2528_v1 }
 0xa85   :  { %2468 = vmatmul.mubr.f32.vlgmr.msra.gmra.mrb[40].mxu1 %v3733_v56  ;;  %v2220_v56 = vld [vmem:[%s3973_s1 + $0x20] sm:$0xff] }
 0xa86   :  { %2470 = vmatprep.mubr.msk.f32.mxu1 %vm2844_vm0, %v4122_v25  ;;  %2243 = vperm.xlu0 %2554, %v2220_v56  }
 0xa89   :  { %2471 = vmatmul.mubr.f32.gmra.mrb[42].mxu1 %v3779_v3 }
 0xa8a   :  { %2473 = vmatprep.mubr.msk.f32.mxu1 %vm2844_vm0, %v4122_v25 }
 0xa8d   :  { %2474 = vmatmul.mubr.f32.gmra.mrb[44].mxu1 %v3825_v26 }
 0xa8e   :  { %2476 = vmatprep.mubr.msk.f32.mxu1 %vm2844_vm0, %v4122_v25 }
 0xa91   :  { %2477 = vmatmul.mubr.f32.gmra.mrb[46].mxu1 %v1991_v53 }
 0xa92   :  { %2479 = vmatprep.mubr.msk.f32.mxu1 %vm2844_vm0, %v4122_v25 }
 0xb05   :  { %v2244_v63 = vpop.permute.xlu0 %2243 }
 0xb38   :  { %v2027_v28 = vpop.f32.mrb[36].mxu1  ;;  %v2068_v49 = vpop.f32.mrb[40].mxu0 }
 0xb39   :  { %v2075_v3 = vadd.f32 %v2027_v28, %v3716_v20  ;;  %v2029_v44 = vpop.f32.mrb[37].mxu1  ;;  %v2070_v17 = vpop.f32.mrb[41].mxu0  ;;  %v2077_v39 = vadd.f32 %v2068_v49, %v3724_v37  ;;  %v2361_v37 = vld [vmem:[%s3984_s12] ss:$0 sm:$0xff] }
 0xb3a   :  { %v2076_v26 = vadd.f32 %v2029_v44, %v3718_v47  ;;  %v2031_v52 = vpop.f32.mrb[38].mxu1  ;;  %v2072_v60 = vpop.f32.mrb[42].mxu0  ;;  %v2078_v4 = vadd.f32 %v2070_v17, %v3727_v55 }
 0xb3b   :  { %v2358_v43 = vmul.f32 -1.442695, %v2075_v3  ;;  %v2032_v62 = vpop.f32.mrb[39].mxu1  ;;  %v2073_v46 = vpop.f32.mrb[43].mxu0  ;;  %v2360_v6 = vmul.f32 -1.442695, %v2077_v39 }
 0xb3c   :  { %v2359_v36 = vmul.f32 -1.442695, %v2076_v26 }
 0xb3d   :  { %2797 = vpow2.f32 %v2358_v43 }
 0xb3e   :  { %2799 = vpow2.f32 %v2359_v36 }
 0xb3f   :  { %2801 = vtanh.f32 %v2078_v4 }
 0xb40   :  { %2803 = vpow2.f32 %v2360_v6 }
 0xb47   :  { %v2798_v8 = vpop.eup %2797 }
 0xb48   :  { %v2088_v9 = vadd.f32 1.0, %v2798_v8  ;;  %v2800_v20 = vpop.eup %2799 }
 0xb49   :  { %v2089_v47 = vadd.f32 1.0, %v2800_v20  ;;  %v2802_v5 = vpop.eup %2801 }
 0xb4a   :  { %2805 = vrcp.f32 %v2088_v9  ;;  %v2804_v7 = vpop.eup %2803 }
 0xb4b   :  { %2807 = vrcp.f32 %v2089_v47  ;;  %v2090_v13 = vadd.f32 1.0, %v2804_v7 }
 0xb4d   :  { %2809 = vrcp.f32 %v2090_v13 }
 0xb54   :  { %v2806_v11 = vpop.eup %2805 }
 0xb55   :  { %v2099_v10 = vmul.f32 %v2806_v11, %v2802_v5  ;;  %v2808_v12 = vpop.eup %2807 }
 0xb56   :  { %v2098_v55 = vmul.f32 %v2808_v12, %v3870_v41  ;;  %v2234_v41 = vpop.permute.xlu1 %2233 }
 0xb57   :  { %v2810_v24 = vpop.eup %2809 }
 0xb58   :  { %v2192_v14 = vpop.f32.mrb[40].mxu1  ;;  %v2100_v15 = vadd.f32 %v2099_v10, %v2098_v55 }
 0xb59   :  { %v2193_v18 = vadd.f32 %v2361_v37, %v2192_v14  ;;  %v2469_v16 = vpop.f32.mrb[41].mxu1 }
 0xb5a   :  { %2811 = vtanh.f32 %v2100_v15  ;;  %v2239_v51 = vpop.permute.xlu1 %2238 }
 0xb5b   :  { %v2246_v29 = vmul.f32 %v2224_v19, %v2193_v18 }
 0xb5c   :  { %v2197_v23 = vpop.f32.mrb[42].mxu1 }
 0xb5d   :  { %2252 = vst.msk [vmem:[%s3985_s13] sm:$0xff] %vm2251_vm2, %v2246_v29  ;;  %v2198_v48 = vadd.f32 %v2361_v37, %v2197_v23  ;;  %v2472_v35 = vpop.f32.mrb[43].mxu1 }
 0xb5f   :  { %v2247_v53 = vmul.f32 %v2229_v27, %v2198_v48 }
 0xb60   :  { %v2202_v0 = vpop.f32.mrb[44].mxu1 }
 0xb61   :  { %2253 = vst.msk [vmem:[%s3985_s13 + $0x8] sm:$0xff] %vm2251_vm2, %v2247_v53  ;;  %v2203_v22 = vadd.f32 %v2361_v37, %v2202_v0  ;;  %v2475_v21 = vpop.f32.mrb[45].mxu1 }
 0xb63   :  { %v2248_v57 = vmul.f32 %v2234_v41, %v2203_v22 }
 0xb64   :  { %v2207_v25 = vpop.f32.mrb[46].mxu1  ;;  %v2812_v31 = vpop.eup %2811 }
 0xb65   :  { %2254 = vst.msk [vmem:[%s3985_s13 + $0x10] sm:$0xff] %vm2251_vm2, %v2248_v57  ;;  %v2208_v59 = vadd.f32 %v2361_v37, %v2207_v25  ;;  %v2478_v42 = vpop.f32.mrb[47].mxu1  ;;  %v2102_v2 = vmul.f32 %v2812_v31, %v2810_v24 }
 0xb67   :  { %v2249_v50 = vmul.f32 %v2239_v51, %v2208_v59  ;;  %2480 = vmatmul.mubr.f32.gmra.mrb[48].mxu1 %v2102_v2 }
 0xb69   :  { %2255 = vst.msk [vmem:[%s3985_s13 + $0x18] sm:$0xff] %vm2251_vm2, %v2249_v50 }
 0xc3a   :  { %v2212_v38 = vpop.f32.mrb[48].mxu1 }
 0xc3b   :  { %v2213_v40 = vadd.f32 %v2361_v37, %v2212_v38  ;;  %v2481_v45 = vpop.f32.mrb[49].mxu1 }
 0xc3d   :  { %v2250_v30 = vmul.f32 %v2244_v63, %v2213_v40 }
 0xc3f   :  { %2256 = vst.msk [vmem:[%s3985_s13 + $0x20] sm:$0xff] %vm2251_vm2, %v2250_v30 }
 0xc40   :  { %2265 = vsyncpa [#allocation3], 1 }

</bundles_post_ra>
